<compile_context>
chip_gen: v7x
topology: tpu7x:2x2x1
jax: 0.10.0
libtpu: 0.0.40
codegen_flags: <defaults>
</compile_context>

<pallas_src>
import functools

import jax
import jax.numpy as jnp
from jax.experimental import pallas as pl
from jax.experimental.pallas import tpu as pltpu

D_MODEL = 768
MAXLEN = 30
N_SEGMENTS = 2
VOCAB_SIZE = 4      # {'[PAD]','[CLS]','[SEP]','[MASK]'}
LN_EPS = 1e-5       # torch.nn.LayerNorm default


def _embedding_kernel(ids_ref,      # SMEM (2B, S) int32: rows [0:B]=tok ids, [B:2B]=seg ids
                      tables_ref,   # VMEM (V+NS, D) f32: fused tok + seg tables
                      pos_ref,      # VMEM (S, D) f32: first S rows of pos table
                      gb_ref,       # VMEM (2, D) f32: [gamma; beta]
                      out_ref,      # VMEM (S, D) f32 (batch dim squeezed)
                      e_ref,        # VMEM scratch (S, D) f32
                      *, vocab, seq_len):
    b = pl.program_id(0)
    nb = pl.num_programs(0)

    # Scalar-driven gather: ids read from SMEM drive dynamic sublane-offset
    # loads from the fused embedding table. O(S*D) work regardless of vocab.
    for s in range(seq_len):                                   # small static S
        tid = ids_ref[b, s]
        sid = ids_ref[nb + b, s]
        tok_row = tables_ref[pl.ds(tid, 1), :]                 # (1, D)
        seg_row = tables_ref[pl.ds(vocab + sid, 1), :]         # (1, D)
        e_ref[pl.ds(s, 1), :] = tok_row + seg_row

    # Vectorized position add + LayerNorm over the lane (feature) dim.
    e = e_ref[...] + pos_ref[...]                              # (S, D) f32
    mean = jnp.mean(e, axis=-1, keepdims=True)
    cen = e - mean
    var = jnp.mean(cen * cen, axis=-1, keepdims=True)
    inv = jax.lax.rsqrt(var + LN_EPS)
    gamma = gb_ref[pl.ds(0, 1), :]                             # (1, D)
    beta = gb_ref[pl.ds(1, 1), :]                              # (1, D)
    y = cen * inv * gamma + beta                               # (S, D)
    out_ref[...] = y.astype(out_ref.dtype)


def bert_embedding(x, seg, tok_table, pos_table, seg_table, gamma, beta):
    B, S = x.shape
    V, D = tok_table.shape
    NS = seg_table.shape[0]
    assert S <= pos_table.shape[0], "seq_len must be <= maxlen"

    # Pack ids into one SMEM-prefetched array: rows [0:B]=token ids, [B:2B]=seg ids.
    ids = jnp.concatenate(
        [x.astype(jnp.int32), seg.astype(jnp.int32)], axis=0)      # (2B, S)
    # Fuse tables / LN params to cut per-call DMA descriptors.
    tables = jnp.concatenate([tok_table, seg_table], axis=0)       # (V+NS, D)
    gb = jnp.stack([gamma, beta], axis=0)                          # (2, D)
    pos = pos_table[:S]                                            # (S, D)

    kernel = functools.partial(_embedding_kernel, vocab=V, seq_len=S)

    return pl.pallas_call(
        kernel,
        out_shape=jax.ShapeDtypeStruct((B, S, D), jnp.float32),
        grid_spec=pltpu.PrefetchScalarGridSpec(
            num_scalar_prefetch=1,          # ids -> SMEM, passed to index_maps
            grid=(B,),
            in_specs=[
                pl.BlockSpec((V + NS, D), lambda b, ids: (0, 0)),   # fused tables
                pl.BlockSpec((S, D), lambda b, ids: (0, 0)),        # pos rows
                pl.BlockSpec((2, D), lambda b, ids: (0, 0)),        # gamma/beta
            ],
            out_specs=pl.BlockSpec((None, S, D), lambda b, ids: (b, 0, 0)),
            scratch_shapes=[pltpu.VMEM((S, D), jnp.float32)],
        ),
        compiler_params=pltpu.CompilerParams(
            dimension_semantics=("parallel",)),   # batch rows are independent
    )(ids, tables, pos, gb)


def reference(x, seg, tok_table, pos_table, seg_table, gamma, beta):
    S = x.shape[1]
    e = tok_table[x] + pos_table[jnp.arange(S)][None, :, :] + seg_table[seg]
    mean = e.mean(-1, keepdims=True)
    var = ((e - mean) ** 2).mean(-1, keepdims=True)
    return (e - mean) / jnp.sqrt(var + LN_EPS) * gamma + beta


if __name__ == "__main__":
    key = jax.random.PRNGKey(0)
    k_tok, k_pos, k_seg, k_x, k_s = jax.random.split(key, 5)

    B, S = 2, 16  # seq_len <= maxlen

    # Deterministic params (nn.Embedding ~ N(0,1); LayerNorm: ones/zeros).
    tok_table = jax.random.normal(k_tok, (VOCAB_SIZE, D_MODEL), jnp.float32)
    pos_table = jax.random.normal(k_pos, (MAXLEN, D_MODEL), jnp.float32)
    seg_table = jax.random.normal(k_seg, (N_SEGMENTS, D_MODEL), jnp.float32)
    gamma = jnp.ones((D_MODEL,), jnp.float32)
    beta = jnp.zeros((D_MODEL,), jnp.float32)

    x = jax.random.randint(k_x, (B, S), 0, VOCAB_SIZE, dtype=jnp.int32)
    seg = jax.random.randint(k_s, (B, S), 0, N_SEGMENTS, dtype=jnp.int32)

    out = bert_embedding(x, seg, tok_table, pos_table, seg_table, gamma, beta)
    out = jax.block_until_ready(out)

    ref = reference(x, seg, tok_table, pos_table, seg_table, gamma, beta)
    assert out.shape == (B, S, D_MODEL)
    assert jnp.allclose(out, ref, atol=1e-4, rtol=1e-4), "mismatch vs reference"

    print("KERNEL_OK")
</pallas_src>

<mosaic_0001>
module attributes {stable_mosaic.version = 11 : i64} {
  func.func @_embedding_kernel(%arg0: i32, %arg1: memref<4x16xi32, #tpu.memory_space<smem>>, %arg2: memref<6x768xf32, #tpu.memory_space<vmem>>, %arg3: memref<16x768xf32, #tpu.memory_space<vmem>>, %arg4: memref<2x768xf32, #tpu.memory_space<vmem>>, %arg5: memref<1x16x768xf32, #tpu.memory_space<vmem>>, %arg6: memref<16x768xf32, #tpu.memory_space<vmem>>) attributes {dimension_semantics = [#tpu.dimension_semantics<parallel>], iteration_bounds = array<i64: 2>, scalar_prefetch = 1 : i64, scratch_operands = 1 : i64, tpu.core_type = #tpu.core_type<tc>, window_params = [{pipeline_mode = #tpu.pipeline_mode<synchronous>, transform_indices = @transform_0, window_bounds = array<i64: 6, 768>}, {pipeline_mode = #tpu.pipeline_mode<synchronous>, transform_indices = @transform_1, window_bounds = array<i64: 16, 768>}, {pipeline_mode = #tpu.pipeline_mode<synchronous>, transform_indices = @transform_2, window_bounds = array<i64: 2, 768>}, {transform_indices = @transform_3, window_bounds = array<i64: 1, 16, 768>}]} {
    %0 = arith.index_cast %arg0 : i32 to index
    %c0 = arith.constant 0 : index
    %1 = memref.load %arg1[%0, %c0] : memref<4x16xi32, #tpu.memory_space<smem>>
    %c2_i32 = arith.constant 2 : i32
    %2 = arith.addi %c2_i32, %arg0 : i32
    %3 = arith.index_cast %2 : i32 to index
    %c0_0 = arith.constant 0 : index
    %4 = memref.load %arg1[%3, %c0_0] : memref<4x16xi32, #tpu.memory_space<smem>>
    %5 = arith.index_cast %1 : i32 to index
    %c0_1 = arith.constant 0 : index
    %6 = vector.load %arg2[%5, %c0_1] : memref<6x768xf32, #tpu.memory_space<vmem>>, vector<1x768xf32>
    %c4_i32 = arith.constant 4 : i32
    %7 = arith.addi %c4_i32, %4 : i32
    %8 = arith.index_cast %7 : i32 to index
    %c0_2 = arith.constant 0 : index
    %9 = vector.load %arg2[%8, %c0_2] : memref<6x768xf32, #tpu.memory_space<vmem>>, vector<1x768xf32>
    %10 = arith.addf %6, %9 : vector<1x768xf32>
    %c0_3 = arith.constant 0 : index
    %c0_4 = arith.constant 0 : index
    %11 = vector.load %arg6[%c0_3, %c0_4] : memref<16x768xf32, #tpu.memory_space<vmem>>, vector<1x768xf32>
    tpu.vector_store %arg6[%c0_3, %c0_4], %10 {strides = array<i32>} : memref<16x768xf32, #tpu.memory_space<vmem>>, vector<1x768xf32>,
    %12 = arith.index_cast %arg0 : i32 to index
    %c1 = arith.constant 1 : index
    %13 = memref.load %arg1[%12, %c1] : memref<4x16xi32, #tpu.memory_space<smem>>
    %c2_i32_5 = arith.constant 2 : i32
    %14 = arith.addi %c2_i32_5, %arg0 : i32
    %15 = arith.index_cast %14 : i32 to index
    %c1_6 = arith.constant 1 : index
    %16 = memref.load %arg1[%15, %c1_6] : memref<4x16xi32, #tpu.memory_space<smem>>
    %17 = arith.index_cast %13 : i32 to index
    %c0_7 = arith.constant 0 : index
    %18 = vector.load %arg2[%17, %c0_7] : memref<6x768xf32, #tpu.memory_space<vmem>>, vector<1x768xf32>
    %c4_i32_8 = arith.constant 4 : i32
    %19 = arith.addi %c4_i32_8, %16 : i32
    %20 = arith.index_cast %19 : i32 to index
    %c0_9 = arith.constant 0 : index
    %21 = vector.load %arg2[%20, %c0_9] : memref<6x768xf32, #tpu.memory_space<vmem>>, vector<1x768xf32>
    %22 = arith.addf %18, %21 : vector<1x768xf32>
    %c1_10 = arith.constant 1 : index
    %c0_11 = arith.constant 0 : index
    %23 = vector.load %arg6[%c1_10, %c0_11] : memref<16x768xf32, #tpu.memory_space<vmem>>, vector<1x768xf32>
    tpu.vector_store %arg6[%c1_10, %c0_11], %22 {strides = array<i32>} : memref<16x768xf32, #tpu.memory_space<vmem>>, vector<1x768xf32>,
    %24 = arith.index_cast %arg0 : i32 to index
    %c2 = arith.constant 2 : index
    %25 = memref.load %arg1[%24, %c2] : memref<4x16xi32, #tpu.memory_space<smem>>
    %c2_i32_12 = arith.constant 2 : i32
    %26 = arith.addi %c2_i32_12, %arg0 : i32
    %27 = arith.index_cast %26 : i32 to index
    %c2_13 = arith.constant 2 : index
    %28 = memref.load %arg1[%27, %c2_13] : memref<4x16xi32, #tpu.memory_space<smem>>
    %29 = arith.index_cast %25 : i32 to index
    %c0_14 = arith.constant 0 : index
    %30 = vector.load %arg2[%29, %c0_14] : memref<6x768xf32, #tpu.memory_space<vmem>>, vector<1x768xf32>
    %c4_i32_15 = arith.constant 4 : i32
    %31 = arith.addi %c4_i32_15, %28 : i32
    %32 = arith.index_cast %31 : i32 to index
    %c0_16 = arith.constant 0 : index
    %33 = vector.load %arg2[%32, %c0_16] : memref<6x768xf32, #tpu.memory_space<vmem>>, vector<1x768xf32>
    %34 = arith.addf %30, %33 : vector<1x768xf32>
    %c2_17 = arith.constant 2 : index
    %c0_18 = arith.constant 0 : index
    %35 = vector.load %arg6[%c2_17, %c0_18] : memref<16x768xf32, #tpu.memory_space<vmem>>, vector<1x768xf32>
    tpu.vector_store %arg6[%c2_17, %c0_18], %34 {strides = array<i32>} : memref<16x768xf32, #tpu.memory_space<vmem>>, vector<1x768xf32>,
    %36 = arith.index_cast %arg0 : i32 to index
    %c3 = arith.constant 3 : index
    %37 = memref.load %arg1[%36, %c3] : memref<4x16xi32, #tpu.memory_space<smem>>
    %c2_i32_19 = arith.constant 2 : i32
    %38 = arith.addi %c2_i32_19, %arg0 : i32
    %39 = arith.index_cast %38 : i32 to index
    %c3_20 = arith.constant 3 : index
    %40 = memref.load %arg1[%39, %c3_20] : memref<4x16xi32, #tpu.memory_space<smem>>
    %41 = arith.index_cast %37 : i32 to index
    %c0_21 = arith.constant 0 : index
    %42 = vector.load %arg2[%41, %c0_21] : memref<6x768xf32, #tpu.memory_space<vmem>>, vector<1x768xf32>
    %c4_i32_22 = arith.constant 4 : i32
    %43 = arith.addi %c4_i32_22, %40 : i32
    %44 = arith.index_cast %43 : i32 to index
    %c0_23 = arith.constant 0 : index
    %45 = vector.load %arg2[%44, %c0_23] : memref<6x768xf32, #tpu.memory_space<vmem>>, vector<1x768xf32>
    %46 = arith.addf %42, %45 : vector<1x768xf32>
    %c3_24 = arith.constant 3 : index
    %c0_25 = arith.constant 0 : index
    %47 = vector.load %arg6[%c3_24, %c0_25] : memref<16x768xf32, #tpu.memory_space<vmem>>, vector<1x768xf32>
    tpu.vector_store %arg6[%c3_24, %c0_25], %46 {strides = array<i32>} : memref<16x768xf32, #tpu.memory_space<vmem>>, vector<1x768xf32>,
    %48 = arith.index_cast %arg0 : i32 to index
    %c4 = arith.constant 4 : index
    %49 = memref.load %arg1[%48, %c4] : memref<4x16xi32, #tpu.memory_space<smem>>
    %c2_i32_26 = arith.constant 2 : i32
    %50 = arith.addi %c2_i32_26, %arg0 : i32
    %51 = arith.index_cast %50 : i32 to index
    %c4_27 = arith.constant 4 : index
    %52 = memref.load %arg1[%51, %c4_27] : memref<4x16xi32, #tpu.memory_space<smem>>
    %53 = arith.index_cast %49 : i32 to index
    %c0_28 = arith.constant 0 : index
    %54 = vector.load %arg2[%53, %c0_28] : memref<6x768xf32, #tpu.memory_space<vmem>>, vector<1x768xf32>
    %c4_i32_29 = arith.constant 4 : i32
    %55 = arith.addi %c4_i32_29, %52 : i32
    %56 = arith.index_cast %55 : i32 to index
    %c0_30 = arith.constant 0 : index
    %57 = vector.load %arg2[%56, %c0_30] : memref<6x768xf32, #tpu.memory_space<vmem>>, vector<1x768xf32>
    %58 = arith.addf %54, %57 : vector<1x768xf32>
    %c4_31 = arith.constant 4 : index
    %c0_32 = arith.constant 0 : index
    %59 = vector.load %arg6[%c4_31, %c0_32] : memref<16x768xf32, #tpu.memory_space<vmem>>, vector<1x768xf32>
    tpu.vector_store %arg6[%c4_31, %c0_32], %58 {strides = array<i32>} : memref<16x768xf32, #tpu.memory_space<vmem>>, vector<1x768xf32>,
    %60 = arith.index_cast %arg0 : i32 to index
    %c5 = arith.constant 5 : index
    %61 = memref.load %arg1[%60, %c5] : memref<4x16xi32, #tpu.memory_space<smem>>
    %c2_i32_33 = arith.constant 2 : i32
    %62 = arith.addi %c2_i32_33, %arg0 : i32
    %63 = arith.index_cast %62 : i32 to index
    %c5_34 = arith.constant 5 : index
    %64 = memref.load %arg1[%63, %c5_34] : memref<4x16xi32, #tpu.memory_space<smem>>
    %65 = arith.index_cast %61 : i32 to index
    %c0_35 = arith.constant 0 : index
    %66 = vector.load %arg2[%65, %c0_35] : memref<6x768xf32, #tpu.memory_space<vmem>>, vector<1x768xf32>
    %c4_i32_36 = arith.constant 4 : i32
    %67 = arith.addi %c4_i32_36, %64 : i32
    %68 = arith.index_cast %67 : i32 to index
    %c0_37 = arith.constant 0 : index
    %69 = vector.load %arg2[%68, %c0_37] : memref<6x768xf32, #tpu.memory_space<vmem>>, vector<1x768xf32>
    %70 = arith.addf %66, %69 : vector<1x768xf32>
    %c5_38 = arith.constant 5 : index
    %c0_39 = arith.constant 0 : index
    %71 = vector.load %arg6[%c5_38, %c0_39] : memref<16x768xf32, #tpu.memory_space<vmem>>, vector<1x768xf32>
    tpu.vector_store %arg6[%c5_38, %c0_39], %70 {strides = array<i32>} : memref<16x768xf32, #tpu.memory_space<vmem>>, vector<1x768xf32>,
    %72 = arith.index_cast %arg0 : i32 to index
    %c6 = arith.constant 6 : index
    %73 = memref.load %arg1[%72, %c6] : memref<4x16xi32, #tpu.memory_space<smem>>
    %c2_i32_40 = arith.constant 2 : i32
    %74 = arith.addi %c2_i32_40, %arg0 : i32
    %75 = arith.index_cast %74 : i32 to index
    %c6_41 = arith.constant 6 : index
    %76 = memref.load %arg1[%75, %c6_41] : memref<4x16xi32, #tpu.memory_space<smem>>
    %77 = arith.index_cast %73 : i32 to index
    %c0_42 = arith.constant 0 : index
    %78 = vector.load %arg2[%77, %c0_42] : memref<6x768xf32, #tpu.memory_space<vmem>>, vector<1x768xf32>
    %c4_i32_43 = arith.constant 4 : i32
    %79 = arith.addi %c4_i32_43, %76 : i32
    %80 = arith.index_cast %79 : i32 to index
    %c0_44 = arith.constant 0 : index
    %81 = vector.load %arg2[%80, %c0_44] : memref<6x768xf32, #tpu.memory_space<vmem>>, vector<1x768xf32>
    %82 = arith.addf %78, %81 : vector<1x768xf32>
    %c6_45 = arith.constant 6 : index
    %c0_46 = arith.constant 0 : index
    %83 = vector.load %arg6[%c6_45, %c0_46] : memref<16x768xf32, #tpu.memory_space<vmem>>, vector<1x768xf32>
    tpu.vector_store %arg6[%c6_45, %c0_46], %82 {strides = array<i32>} : memref<16x768xf32, #tpu.memory_space<vmem>>, vector<1x768xf32>,
    %84 = arith.index_cast %arg0 : i32 to index
    %c7 = arith.constant 7 : index
    %85 = memref.load %arg1[%84, %c7] : memref<4x16xi32, #tpu.memory_space<smem>>
    %c2_i32_47 = arith.constant 2 : i32
    %86 = arith.addi %c2_i32_47, %arg0 : i32
    %87 = arith.index_cast %86 : i32 to index
    %c7_48 = arith.constant 7 : index
    %88 = memref.load %arg1[%87, %c7_48] : memref<4x16xi32, #tpu.memory_space<smem>>
    %89 = arith.index_cast %85 : i32 to index
    %c0_49 = arith.constant 0 : index
    %90 = vector.load %arg2[%89, %c0_49] : memref<6x768xf32, #tpu.memory_space<vmem>>, vector<1x768xf32>
    %c4_i32_50 = arith.constant 4 : i32
    %91 = arith.addi %c4_i32_50, %88 : i32
    %92 = arith.index_cast %91 : i32 to index
    %c0_51 = arith.constant 0 : index
    %93 = vector.load %arg2[%92, %c0_51] : memref<6x768xf32, #tpu.memory_space<vmem>>, vector<1x768xf32>
    %94 = arith.addf %90, %93 : vector<1x768xf32>
    %c7_52 = arith.constant 7 : index
    %c0_53 = arith.constant 0 : index
    %95 = vector.load %arg6[%c7_52, %c0_53] : memref<16x768xf32, #tpu.memory_space<vmem>>, vector<1x768xf32>
    tpu.vector_store %arg6[%c7_52, %c0_53], %94 {strides = array<i32>} : memref<16x768xf32, #tpu.memory_space<vmem>>, vector<1x768xf32>,
    %96 = arith.index_cast %arg0 : i32 to index
    %c8 = arith.constant 8 : index
    %97 = memref.load %arg1[%96, %c8] : memref<4x16xi32, #tpu.memory_space<smem>>
    %c2_i32_54 = arith.constant 2 : i32
    %98 = arith.addi %c2_i32_54, %arg0 : i32
    %99 = arith.index_cast %98 : i32 to index
    %c8_55 = arith.constant 8 : index
    %100 = memref.load %arg1[%99, %c8_55] : memref<4x16xi32, #tpu.memory_space<smem>>
    %101 = arith.index_cast %97 : i32 to index
    %c0_56 = arith.constant 0 : index
    %102 = vector.load %arg2[%101, %c0_56] : memref<6x768xf32, #tpu.memory_space<vmem>>, vector<1x768xf32>
    %c4_i32_57 = arith.constant 4 : i32
    %103 = arith.addi %c4_i32_57, %100 : i32
    %104 = arith.index_cast %103 : i32 to index
    %c0_58 = arith.constant 0 : index
    %105 = vector.load %arg2[%104, %c0_58] : memref<6x768xf32, #tpu.memory_space<vmem>>, vector<1x768xf32>
    %106 = arith.addf %102, %105 : vector<1x768xf32>
    %c8_59 = arith.constant 8 : index
    %c0_60 = arith.constant 0 : index
    %107 = vector.load %arg6[%c8_59, %c0_60] : memref<16x768xf32, #tpu.memory_space<vmem>>, vector<1x768xf32>
    tpu.vector_store %arg6[%c8_59, %c0_60], %106 {strides = array<i32>} : memref<16x768xf32, #tpu.memory_space<vmem>>, vector<1x768xf32>,
    %108 = arith.index_cast %arg0 : i32 to index
    %c9 = arith.constant 9 : index
    %109 = memref.load %arg1[%108, %c9] : memref<4x16xi32, #tpu.memory_space<smem>>
    %c2_i32_61 = arith.constant 2 : i32
    %110 = arith.addi %c2_i32_61, %arg0 : i32
    %111 = arith.index_cast %110 : i32 to index
    %c9_62 = arith.constant 9 : index
    %112 = memref.load %arg1[%111, %c9_62] : memref<4x16xi32, #tpu.memory_space<smem>>
    %113 = arith.index_cast %109 : i32 to index
    %c0_63 = arith.constant 0 : index
    %114 = vector.load %arg2[%113, %c0_63] : memref<6x768xf32, #tpu.memory_space<vmem>>, vector<1x768xf32>
    %c4_i32_64 = arith.constant 4 : i32
    %115 = arith.addi %c4_i32_64, %112 : i32
    %116 = arith.index_cast %115 : i32 to index
    %c0_65 = arith.constant 0 : index
    %117 = vector.load %arg2[%116, %c0_65] : memref<6x768xf32, #tpu.memory_space<vmem>>, vector<1x768xf32>
    %118 = arith.addf %114, %117 : vector<1x768xf32>
    %c9_66 = arith.constant 9 : index
    %c0_67 = arith.constant 0 : index
    %119 = vector.load %arg6[%c9_66, %c0_67] : memref<16x768xf32, #tpu.memory_space<vmem>>, vector<1x768xf32>
    tpu.vector_store %arg6[%c9_66, %c0_67], %118 {strides = array<i32>} : memref<16x768xf32, #tpu.memory_space<vmem>>, vector<1x768xf32>,
    %120 = arith.index_cast %arg0 : i32 to index
    %c10 = arith.constant 10 : index
    %121 = memref.load %arg1[%120, %c10] : memref<4x16xi32, #tpu.memory_space<smem>>
    %c2_i32_68 = arith.constant 2 : i32
    %122 = arith.addi %c2_i32_68, %arg0 : i32
    %123 = arith.index_cast %122 : i32 to index
    %c10_69 = arith.constant 10 : index
    %124 = memref.load %arg1[%123, %c10_69] : memref<4x16xi32, #tpu.memory_space<smem>>
    %125 = arith.index_cast %121 : i32 to index
    %c0_70 = arith.constant 0 : index
    %126 = vector.load %arg2[%125, %c0_70] : memref<6x768xf32, #tpu.memory_space<vmem>>, vector<1x768xf32>
    %c4_i32_71 = arith.constant 4 : i32
    %127 = arith.addi %c4_i32_71, %124 : i32
    %128 = arith.index_cast %127 : i32 to index
    %c0_72 = arith.constant 0 : index
    %129 = vector.load %arg2[%128, %c0_72] : memref<6x768xf32, #tpu.memory_space<vmem>>, vector<1x768xf32>
    %130 = arith.addf %126, %129 : vector<1x768xf32>
    %c10_73 = arith.constant 10 : index
    %c0_74 = arith.constant 0 : index
    %131 = vector.load %arg6[%c10_73, %c0_74] : memref<16x768xf32, #tpu.memory_space<vmem>>, vector<1x768xf32>
    tpu.vector_store %arg6[%c10_73, %c0_74], %130 {strides = array<i32>} : memref<16x768xf32, #tpu.memory_space<vmem>>, vector<1x768xf32>,
    %132 = arith.index_cast %arg0 : i32 to index
    %c11 = arith.constant 11 : index
    %133 = memref.load %arg1[%132, %c11] : memref<4x16xi32, #tpu.memory_space<smem>>
    %c2_i32_75 = arith.constant 2 : i32
    %134 = arith.addi %c2_i32_75, %arg0 : i32
    %135 = arith.index_cast %134 : i32 to index
    %c11_76 = arith.constant 11 : index
    %136 = memref.load %arg1[%135, %c11_76] : memref<4x16xi32, #tpu.memory_space<smem>>
    %137 = arith.index_cast %133 : i32 to index
    %c0_77 = arith.constant 0 : index
    %138 = vector.load %arg2[%137, %c0_77] : memref<6x768xf32, #tpu.memory_space<vmem>>, vector<1x768xf32>
    %c4_i32_78 = arith.constant 4 : i32
    %139 = arith.addi %c4_i32_78, %136 : i32
    %140 = arith.index_cast %139 : i32 to index
    %c0_79 = arith.constant 0 : index
    %141 = vector.load %arg2[%140, %c0_79] : memref<6x768xf32, #tpu.memory_space<vmem>>, vector<1x768xf32>
    %142 = arith.addf %138, %141 : vector<1x768xf32>
    %c11_80 = arith.constant 11 : index
    %c0_81 = arith.constant 0 : index
    %143 = vector.load %arg6[%c11_80, %c0_81] : memref<16x768xf32, #tpu.memory_space<vmem>>, vector<1x768xf32>
    tpu.vector_store %arg6[%c11_80, %c0_81], %142 {strides = array<i32>} : memref<16x768xf32, #tpu.memory_space<vmem>>, vector<1x768xf32>,
    %144 = arith.index_cast %arg0 : i32 to index
    %c12 = arith.constant 12 : index
    %145 = memref.load %arg1[%144, %c12] : memref<4x16xi32, #tpu.memory_space<smem>>
    %c2_i32_82 = arith.constant 2 : i32
    %146 = arith.addi %c2_i32_82, %arg0 : i32
    %147 = arith.index_cast %146 : i32 to index
    %c12_83 = arith.constant 12 : index
    %148 = memref.load %arg1[%147, %c12_83] : memref<4x16xi32, #tpu.memory_space<smem>>
    %149 = arith.index_cast %145 : i32 to index
    %c0_84 = arith.constant 0 : index
    %150 = vector.load %arg2[%149, %c0_84] : memref<6x768xf32, #tpu.memory_space<vmem>>, vector<1x768xf32>
    %c4_i32_85 = arith.constant 4 : i32
    %151 = arith.addi %c4_i32_85, %148 : i32
    %152 = arith.index_cast %151 : i32 to index
    %c0_86 = arith.constant 0 : index
    %153 = vector.load %arg2[%152, %c0_86] : memref<6x768xf32, #tpu.memory_space<vmem>>, vector<1x768xf32>
    %154 = arith.addf %150, %153 : vector<1x768xf32>
    %c12_87 = arith.constant 12 : index
    %c0_88 = arith.constant 0 : index
    %155 = vector.load %arg6[%c12_87, %c0_88] : memref<16x768xf32, #tpu.memory_space<vmem>>, vector<1x768xf32>
    tpu.vector_store %arg6[%c12_87, %c0_88], %154 {strides = array<i32>} : memref<16x768xf32, #tpu.memory_space<vmem>>, vector<1x768xf32>,
    %156 = arith.index_cast %arg0 : i32 to index
    %c13 = arith.constant 13 : index
    %157 = memref.load %arg1[%156, %c13] : memref<4x16xi32, #tpu.memory_space<smem>>
    %c2_i32_89 = arith.constant 2 : i32
    %158 = arith.addi %c2_i32_89, %arg0 : i32
    %159 = arith.index_cast %158 : i32 to index
    %c13_90 = arith.constant 13 : index
    %160 = memref.load %arg1[%159, %c13_90] : memref<4x16xi32, #tpu.memory_space<smem>>
    %161 = arith.index_cast %157 : i32 to index
    %c0_91 = arith.constant 0 : index
    %162 = vector.load %arg2[%161, %c0_91] : memref<6x768xf32, #tpu.memory_space<vmem>>, vector<1x768xf32>
    %c4_i32_92 = arith.constant 4 : i32
    %163 = arith.addi %c4_i32_92, %160 : i32
    %164 = arith.index_cast %163 : i32 to index
    %c0_93 = arith.constant 0 : index
    %165 = vector.load %arg2[%164, %c0_93] : memref<6x768xf32, #tpu.memory_space<vmem>>, vector<1x768xf32>
    %166 = arith.addf %162, %165 : vector<1x768xf32>
    %c13_94 = arith.constant 13 : index
    %c0_95 = arith.constant 0 : index
    %167 = vector.load %arg6[%c13_94, %c0_95] : memref<16x768xf32, #tpu.memory_space<vmem>>, vector<1x768xf32>
    tpu.vector_store %arg6[%c13_94, %c0_95], %166 {strides = array<i32>} : memref<16x768xf32, #tpu.memory_space<vmem>>, vector<1x768xf32>,
    %168 = arith.index_cast %arg0 : i32 to index
    %c14 = arith.constant 14 : index
    %169 = memref.load %arg1[%168, %c14] : memref<4x16xi32, #tpu.memory_space<smem>>
    %c2_i32_96 = arith.constant 2 : i32
    %170 = arith.addi %c2_i32_96, %arg0 : i32
    %171 = arith.index_cast %170 : i32 to index
    %c14_97 = arith.constant 14 : index
    %172 = memref.load %arg1[%171, %c14_97] : memref<4x16xi32, #tpu.memory_space<smem>>
    %173 = arith.index_cast %169 : i32 to index
    %c0_98 = arith.constant 0 : index
    %174 = vector.load %arg2[%173, %c0_98] : memref<6x768xf32, #tpu.memory_space<vmem>>, vector<1x768xf32>
    %c4_i32_99 = arith.constant 4 : i32
    %175 = arith.addi %c4_i32_99, %172 : i32
    %176 = arith.index_cast %175 : i32 to index
    %c0_100 = arith.constant 0 : index
    %177 = vector.load %arg2[%176, %c0_100] : memref<6x768xf32, #tpu.memory_space<vmem>>, vector<1x768xf32>
    %178 = arith.addf %174, %177 : vector<1x768xf32>
    %c14_101 = arith.constant 14 : index
    %c0_102 = arith.constant 0 : index
    %179 = vector.load %arg6[%c14_101, %c0_102] : memref<16x768xf32, #tpu.memory_space<vmem>>, vector<1x768xf32>
    tpu.vector_store %arg6[%c14_101, %c0_102], %178 {strides = array<i32>} : memref<16x768xf32, #tpu.memory_space<vmem>>, vector<1x768xf32>,
    %180 = arith.index_cast %arg0 : i32 to index
    %c15 = arith.constant 15 : index
    %181 = memref.load %arg1[%180, %c15] : memref<4x16xi32, #tpu.memory_space<smem>>
    %c2_i32_103 = arith.constant 2 : i32
    %182 = arith.addi %c2_i32_103, %arg0 : i32
    %183 = arith.index_cast %182 : i32 to index
    %c15_104 = arith.constant 15 : index
    %184 = memref.load %arg1[%183, %c15_104] : memref<4x16xi32, #tpu.memory_space<smem>>
    %185 = arith.index_cast %181 : i32 to index
    %c0_105 = arith.constant 0 : index
    %186 = vector.load %arg2[%185, %c0_105] : memref<6x768xf32, #tpu.memory_space<vmem>>, vector<1x768xf32>
    %c4_i32_106 = arith.constant 4 : i32
    %187 = arith.addi %c4_i32_106, %184 : i32
    %188 = arith.index_cast %187 : i32 to index
    %c0_107 = arith.constant 0 : index
    %189 = vector.load %arg2[%188, %c0_107] : memref<6x768xf32, #tpu.memory_space<vmem>>, vector<1x768xf32>
    %190 = arith.addf %186, %189 : vector<1x768xf32>
    %c15_108 = arith.constant 15 : index
    %c0_109 = arith.constant 0 : index
    %191 = vector.load %arg6[%c15_108, %c0_109] : memref<16x768xf32, #tpu.memory_space<vmem>>, vector<1x768xf32>
    tpu.vector_store %arg6[%c15_108, %c0_109], %190 {strides = array<i32>} : memref<16x768xf32, #tpu.memory_space<vmem>>, vector<1x768xf32>,
    %c0_110 = arith.constant 0 : index
    %c0_111 = arith.constant 0 : index
    %192 = vector.load %arg6[%c0_110, %c0_111] : memref<16x768xf32, #tpu.memory_space<vmem>>, vector<16x768xf32>
    %c0_112 = arith.constant 0 : index
    %c0_113 = arith.constant 0 : index
    %193 = vector.load %arg3[%c0_112, %c0_113] : memref<16x768xf32, #tpu.memory_space<vmem>>, vector<16x768xf32>
    %194 = arith.addf %192, %193 : vector<16x768xf32>
    %cst = arith.constant dense<0.000000e+00> : vector<16xf32>
    %195 = vector.multi_reduction <add>, %194, %cst [1] : vector<16x768xf32> to vector<16xf32>
    %196 = vector.shape_cast %195 : vector<16xf32> to vector<16x1xf32>
    %cst_114 = arith.constant 7.680000e+02 : f32
    %197 = vector.broadcast %cst_114 : f32 to vector<16x1xf32>
    %198 = arith.divf %196, %197 : vector<16x1xf32>
    %199 = vector.broadcast %198 : vector<16x1xf32> to vector<16x768xf32>
    %200 = arith.subf %194, %199 : vector<16x768xf32>
    %201 = arith.mulf %200, %200 : vector<16x768xf32>
    %cst_115 = arith.constant dense<0.000000e+00> : vector<16xf32>
    %202 = vector.multi_reduction <add>, %201, %cst_115 [1] : vector<16x768xf32> to vector<16xf32>
    %203 = vector.shape_cast %202 : vector<16xf32> to vector<16x1xf32>
    %cst_116 = arith.constant 7.680000e+02 : f32
    %204 = vector.broadcast %cst_116 : f32 to vector<16x1xf32>
    %205 = arith.divf %203, %204 : vector<16x1xf32>
    %cst_117 = arith.constant 9.99999974E-6 : f32
    %206 = vector.broadcast %cst_117 : f32 to vector<16x1xf32>
    %207 = arith.addf %205, %206 : vector<16x1xf32>
    %208 = math.rsqrt %207 : vector<16x1xf32>
    %c0_118 = arith.constant 0 : index
    %c0_119 = arith.constant 0 : index
    %209 = vector.load %arg4[%c0_118, %c0_119] : memref<2x768xf32, #tpu.memory_space<vmem>>, vector<1x768xf32>
    %c1_120 = arith.constant 1 : index
    %c0_121 = arith.constant 0 : index
    %210 = vector.load %arg4[%c1_120, %c0_121] : memref<2x768xf32, #tpu.memory_space<vmem>>, vector<1x768xf32>
    %211 = vector.broadcast %208 : vector<16x1xf32> to vector<16x768xf32>
    %212 = arith.mulf %200, %211 : vector<16x768xf32>
    %213 = vector.broadcast %209 : vector<1x768xf32> to vector<16x768xf32>
    %214 = arith.mulf %212, %213 : vector<16x768xf32>
    %215 = vector.broadcast %210 : vector<1x768xf32> to vector<16x768xf32>
    %216 = arith.addf %214, %215 : vector<16x768xf32>
    %c0_122 = arith.constant 0 : index
    %c0_123 = arith.constant 0 : index
    %c0_124 = arith.constant 0 : index
    %217 = vector.load %arg5[%c0_122, %c0_123, %c0_124] : memref<1x16x768xf32, #tpu.memory_space<vmem>>, vector<1x16x768xf32>
    %218 = vector.shape_cast %217 : vector<1x16x768xf32> to vector<16x768xf32>
    %219 = vector.shape_cast %216 : vector<16x768xf32> to vector<1x16x768xf32>
    tpu.vector_store %arg5[%c0_122, %c0_123, %c0_124], %219 {strides = array<i32>} : memref<1x16x768xf32, #tpu.memory_space<vmem>>, vector<1x16x768xf32>,
    return
  }
  func.func @transform_0(%arg0: i32, %arg1: memref<4x16xi32, #tpu.memory_space<smem>>) -> (i32, i32) {
    %c0_i32 = arith.constant 0 : i32
    %c0_i32_0 = arith.constant 0 : i32
    %c0_i32_1 = arith.constant 0 : i32
    return %c0_i32, %c0_i32_0 : i32, i32
  }
  func.func @transform_1(%arg0: i32, %arg1: memref<4x16xi32, #tpu.memory_space<smem>>) -> (i32, i32) {
    %c0_i32 = arith.constant 0 : i32
    %c0_i32_0 = arith.constant 0 : i32
    %c0_i32_1 = arith.constant 0 : i32
    return %c0_i32, %c0_i32_0 : i32, i32
  }
  func.func @transform_2(%arg0: i32, %arg1: memref<4x16xi32, #tpu.memory_space<smem>>) -> (i32, i32) {
    %c0_i32 = arith.constant 0 : i32
    %c0_i32_0 = arith.constant 0 : i32
    %c0_i32_1 = arith.constant 0 : i32
    return %c0_i32, %c0_i32_0 : i32, i32
  }
  func.func @transform_3(%arg0: i32, %arg1: memref<4x16xi32, #tpu.memory_space<smem>>) -> (i32, i32, i32) {
    %c0_i32 = arith.constant 0 : i32
    %c0_i32_0 = arith.constant 0 : i32
    %c0_i32_1 = arith.constant 0 : i32
    return %arg0, %c0_i32, %c0_i32_0 : i32, i32, i32
  }
}

</mosaic_0001>

<bundles_post_ra>
// kernel: tpu_custom_call.1
= control target key start
LH: loop header
LB: loop body
LE: loop exit
PB: predicated region body
PF: predicated region fallthrough
CT: control target
= control target key end

     0   :  { %s1892_s0 = inlined_call_operand.hbm [shape: s32[4,16], index: 0, kind: input, shape index: {}]   ;;  %s1893_s1 = inlined_call_operand.hbm [shape: f32[6,768], index: 1, kind: input, shape index: {}]   ;;  %s1894_s2 = inlined_call_operand.hbm [shape: f32[16,768], index: 2, kind: input, shape index: {}]   ;;  %s1895_s3 = inlined_call_operand.hbm [shape: f32[2,768], index: 3, kind: input, shape index: {}]   ;;  %s1896_s4 = inlined_call_operand.hbm [shape: f32[2,16,768], index: 4, kind: output, shape index: {}]  }
   0x1   :  { %1901 = sst [smem:[#allocation18_spill]] %s1893_s1  ;;  %s1224_s17 = scalar_lea.hbm %s1892_s0, 64 }
   0x2   :  { %1902 = sst [smem:[#allocation19_spill]] %s1894_s2  ;;  %p1225_p0 = scmp.ne.s32.totalorder %s1892_s0, %s1224_s17 }
   0x3   :  { %1903 = sst [smem:[#allocation20_spill]] %s1895_s3  ;;  %p1228_p1 = scmp.lt.u32.totalorder %s1224_s17, %s1892_s0 }
   0x5   :  { %p1230_p2 = pnand %p1228_p1, %p1225_p0 }
   0x7   :  { %1233 = shalt.err (!%p1230_p2)  }
   0x8   :  { %s1392_s22 = smov [#allocation4]  }
   0x9   :  { %10 = dma.hbm_to_smem %s1892_s0, 64, %s1392_s22, [#allocation3] }
   0xa   :  { %1362 = dma.done.wait [#allocation3], 64 }
   0xb   :  { %1363 = vsyncadd [#allocation3], 4294967232 }
   0xc   :  { %12 = sfence }
   0xd   :  { %13 = vsyncpa [#allocation6], 0 }
   0xe   :  { %14 = vsyncpa [#allocation9], 0 }
   0xf   :  { %15 = vsyncpa [#allocation7], 0 }
  0x10   :  { %17 = vsyncpa [#allocation7 + $0x1], 0  ;;  %s1438_s25 = smov 0   ;;  %s1440_s26 = smov 0  }
  0x11   :  { %s1442_s27 = smov 0   ;;  %s1444_s28 = smov 0  }
  0x12 LB: > { %1904 = sst [smem:[#allocation16_spill]] %s1386_s27  ;;  %s1459_s0 = sadd.s32 4294967295, %s1390_s28   ;;  %s1390_s28 = sphi %s1444_s28, %s1928_s28   ;;  %s1386_s27 = sphi %s1442_s27, %s1925_s27   ;;  %s1382_s26 = sphi %s1440_s26, %s1927_s26   ;;  %s1378_s25 = sphi %s1438_s25, %s1926_s25  }
  0x13   : > { %s1095_s29 = sadd.s32 4294967294, %s1390_s28   ;;  %s1463_s30 = sadd.s32 1, %s1390_s28  }
  0x14   : > { %s93_s5 = sadd.s32 1, %s1386_s27  ;;  %s90_s6 = ssub.s32 %s1390_s28, %s1463_s30 }
  0x15   : > { %p103_p3 = scmp.ne.s32.totalorder %s1386_s27, %s1382_s26  ;;  %p91_p4 = scmp.eq.s32.totalorder %s90_s6, 0 }
  0x16   : > { %p104_p5 = scmp.eq.s32.totalorder %s1459_s0, 1  ;;  %p109_p6 = scmp.ne.s32.totalorder %s1382_s26, %s1378_s25 }
  0x17   : > { %p110_p7 = scmp.eq.s32.totalorder %s1095_s29, 1  ;;  %p1096_p10 = scmp.ge.s32.totalorder %s1390_s28, 1 }
  0x18   : > { %s1474_s7 = scalar_select %p91_p4, %s1386_s27, %s93_s5  }
  0x19   : > { %p1476_p8 = por %p104_p5, %p103_p3  ;;  %p1480_p9 = por %p110_p7, %p109_p6 }
  0x1a   : > { %1905 = sst [smem:[#allocation17_spill]] %s1474_s7  ;;  %p117_p11 = scmp.lt.s32.totalorder %s1390_s28, 3 }
  0x1b   : > { %s1906_s8 = scalar_select %p1476_p8, 1, 0 }
  0x1c   : > { %s1907_s9 = scalar_select %p1480_p9, 1, 0 }
  0x1d   : > { %p1897_p12 = scmp.eq.s32.totalorder %s1459_s0, 0  ;;  %p1487_p13 = pnand %p1096_p10, %p117_p11 }
  0x1e   : > { %s1393_s11 = smov [#allocation8]   ;;  %s1394_s14 = smov [#allocation5]  }
  0x1f   : > { %s1908_s10 = scalar_select %p1487_p13, 1, 0 }
  0x20   : > { %s140_s12 = sshll.u32 %s1393_s11, 4  ;;  %p1159_p0 = pneg %p1487_p13  ;;  %s1493_s12 = int_to_ptr.vmem [resolvable:$true] %s140_s12 }
  0x21   : > { %s130_s15 = sshll.u32 %s1394_s14, 4  ;;  %s1395_s16 = smov [#allocation10]   ;;  %s1501_s15 = int_to_ptr.vmem [resolvable:$true] %s130_s15 }
  0x22   : > { %p1497_p1 = pnand %p1897_p12, %p1159_p0  ;;  %s1503_s17 = sshll.u32 %s1395_s16, 4  ;;  %s155_s17 = int_to_ptr.vmem [resolvable:$true] %s1503_s17 }
  0x23   : > { %s1910_s2 = sld [smem:[#allocation19_spill]] }
  0x24   : > { %p1513_p3 = pneg %p1497_p1 }
  0x29   : > { %s1234_s20 = scalar_lea.hbm %s1910_s2, 1536 }
  0x2a   : > { %p1235_p2 = scmp.ne.s32.totalorder %s1910_s2, %s1234_s20  ;;  %p1241_p6 = scmp.lt.u32.totalorder %s1234_s20, %s1910_s2 }
  0x2c   : > { %p1237_p4 = pnand %p1513_p3, %p1235_p2 }
  0x2e   : > { %p1238_p5 = pneg %p1237_p4 }
  0x30   : > { %p1243_p7 = pnand %p1241_p6, %p1238_p5 }
  0x32   : > { %1246 = shalt.err (!%p1243_p7)
}
  0x33   : > { %s1247_s5 = scalar_lea.vmem %s1493_s12, 1536  ;;  %p1255_p12 = scmp.lt.s32.totalorder %s1493_s12, %s1493_s12 }
  0x34   : > { %p1248_p10 = scmp.ne.s32.totalorder %s1493_s12, %s1247_s5  ;;  %p1256_p9 = scmp.lt.s32.totalorder %s1247_s5, %s1247_s5 }
  0x36   : > { %p1250_p11 = pnand %p1248_p10, %p1513_p3  ;;  %p1257_p2 = por %p1256_p9, %p1255_p12 }
  0x38   : > { %p1251_p0 = pneg %p1250_p11 }
  0x3a   : > { %p1258_p4 = pnand %p1257_p2, %p1251_p0 }
  0x3c   : > { %1261 = shalt.err (!%p1258_p4)
}
  0x3d   : > { %s1396_s6 = smov 768   ;;  %s1397_s11 = smov 48  }
  0x3e   : > { %1165 = dma.hbm_to_vmem [thread:$0]  (!%p1497_p1), %s1910_s2, 1536, %s1493_s12, [#allocation9], %s1396_s6, %s1396_s6, %s1397_s11  }
  0x3f   : > { %s1912_s1 = sld [smem:[#allocation18_spill]] }
  0x45   : > { %s1262_s20 = scalar_lea.hbm %s1912_s1, 768 }
  0x46   : > { %p1263_p9 = scmp.ne.s32.totalorder %s1912_s1, %s1262_s20  ;;  %p1269_p6 = scmp.lt.u32.totalorder %s1262_s20, %s1912_s1 }
  0x48   : > { %p1265_p12 = pnand %p1263_p9, %p1513_p3 }
  0x4a   : > { %p1266_p5 = pneg %p1265_p12 }
  0x4c   : > { %p1271_p7 = pnand %p1269_p6, %p1266_p5 }
  0x4e   : > { %1274 = shalt.err (!%p1271_p7)
}
  0x4f   : > { %s1275_s12 = scalar_lea.vmem %s1501_s15, 768  ;;  %p1283_p2 = scmp.lt.s32.totalorder %s1501_s15, %s1501_s15 }
  0x50   : > { %p1276_p10 = scmp.ne.s32.totalorder %s1501_s15, %s1275_s12  ;;  %p1284_p4 = scmp.lt.s32.totalorder %s1275_s12, %s1275_s12 }
  0x52   : > { %p1278_p11 = pnand %p1276_p10, %p1513_p3  ;;  %p1285_p9 = por %p1284_p4, %p1283_p2 }
  0x54   : > { %p1279_p0 = pneg %p1278_p11 }
  0x56   : > { %p1286_p12 = pnand %p1285_p9, %p1279_p0 }
  0x58   : > { %1289 = shalt.err (!%p1286_p12)
}
  0x59   : > { %1162 = dma.hbm_to_vmem [thread:$0]  (!%p1497_p1), %s1912_s1, 768, %s1501_s15, [#allocation6]  }
  0x5a   : > { %s1913_s3 = sld [smem:[#allocation20_spill]] }
  0x60   : > { %s1290_s16 = scalar_lea.hbm %s1913_s3, 192 }
  0x61   : > { %p1291_p5 = scmp.ne.s32.totalorder %s1913_s3, %s1290_s16  ;;  %p1297_p10 = scmp.lt.u32.totalorder %s1290_s16, %s1913_s3 }
  0x63   : > { %p1293_p6 = pnand %p1291_p5, %p1513_p3 }
  0x65   : > { %p1294_p7 = pneg %p1293_p6 }
  0x67   : > { %p1299_p11 = pnand %p1297_p10, %p1294_p7 }
  0x69   : > { %1302 = shalt.err (!%p1299_p11)
}
  0x6a   : > { %s1303_s22 = scalar_lea.vmem %s155_s17, 192  ;;  %p1311_p9 = scmp.lt.s32.totalorder %s155_s17, %s155_s17 }
  0x6b   : > { %p1304_p0 = scmp.ne.s32.totalorder %s155_s17, %s1303_s22  ;;  %p1312_p12 = scmp.lt.s32.totalorder %s1303_s22, %s1303_s22 }
  0x6d   : > { %p1306_p2 = pnand %p1304_p0, %p1513_p3  ;;  %p1313_p8 = por %p1312_p12, %p1311_p9 }
  0x6f   : > { %p1307_p4 = pneg %p1306_p2 }
  0x71   : > { %p1314_p13 = pnand %p1313_p8, %p1307_p4 }
  0x73   : > { %1317 = shalt.err (!%p1314_p13)
}
  0x74   : > { %1168 = dma.hbm_to_vmem [thread:$0]  (!%p1497_p1), %s1913_s3, 192, %s155_s17, [#allocation9]  }
  0x75   : > { %p1914_p5 = scmp.ne.s32.totalorder %s1908_s10, 0 }
  0x76   : > { %p1915_p6 = scmp.eq.s32.totalorder (!%p1914_p5), %s1459_s0, 0 }
  0x77   : > { %167 = sbr.rel (%p1914_p5) target bundleno = 634 (0x27a), region = 32 }
  0x7e   : > { %1365 = dma.done.wait (%p1915_p6), [#allocation6], 768   ;;  %p1916_p3 = pmov %p1915_p6 }
  0x80   : > { %1367 = vsyncadd (%p1916_p3), [#allocation6], 4294966528  ;;  %p1917_p7 = pmov %p1916_p3 }
  0x81   : > { %p1918_p8 = pmov %p1916_p3 }
  0x82   : > { %1369 = dma.done.wait (%p1917_p7), [#allocation9], 1728  }
  0x83   : > { %1371 = vsyncadd (%p1918_p8), [#allocation9], 4294965568  ;;  %s1587_s13 = sshll.u32 %s1459_s0, 7  ;;  %v223_v2 = vlaneseq  ;;  %v706_v60 = vld [vmem:[#allocation8] sm:$0xff]  ;;  %v707_v61 = vld [vmem:[#allocation8 + $0x8] sm:$0xff]  ;;  %p1922_p1 = scmp.ne.s32.totalorder %s1906_s8, 0 }
  0x84   : > { %s195_s10 = sld [smem:[#allocation4 + %s1587_s13]]  ;;  %s1591_s17 = sadd.s32 256, %s1587_s13  ;;  %v708_v62 = vld [vmem:[#allocation8 + $0x10] sm:$0xff] }
  0x85   : > { %s198_s23 = sld [smem:[#allocation4 + %s1591_s17]]  ;;  %s229_s29 = sadd.s32 1, %s1587_s13  ;;  %vm1611_vm0 = vcmp.lt.s32.totalorder %v223_v2, 768 }
  0x86   : > { %s1595_s12 = sld [smem:[#allocation4 + %s229_s29]]  ;;  %s231_s5 = sadd.s32 1, %s1591_s17 }
  0x87   : > { %s1598_s6 = sld [smem:[#allocation4 + %s231_s5]]  ;;  %s260_s11 = sadd.s32 2, %s1587_s13 }
  0x88   : > { %s1601_s14 = sld [smem:[#allocation4 + %s260_s11]]  ;;  %s262_s16 = sadd.s32 2, %s1591_s17 }
  0x89   : > { %s1604_s18 = sld [smem:[#allocation4 + %s262_s16]] }
  0x8a   : > { %s199_s20 = sshra.s32 %s195_s10, 3  ;;  %s202_s21 = sand.u32 7, %s195_s10 }
  0x8b   : > { %s1106_s22 = smul.u32 48, %s199_s20  ;;  %s210_s15 = sadd.s32 4, %s198_s23 }
  0x8c   : > { %s211_s24 = sshra.s32 %s210_s15, 3  ;;  %s214_s1 = sand.u32 7, %s210_s15 }
  0x8d   : > { %s205_s29 = sadd.s32 %s1106_s22, %s202_s21  ;;  %s1107_s2 = smul.u32 48, %s211_s24 }
  0x8e   : > { %s233_s3 = sshra.s32 %s1595_s12, 3  ;;  %s206_s5 = scalar_lea.vmem [#allocation5], %s205_s29 }
  0x8f   : > { %v207_v0 = vld [vmem:[%s206_s5] ss:$8 sm:$0xf]  ;;  %s217_s11 = sadd.s32 %s1107_s2, %s214_s1  ;;  %s236_s16 = sand.u32 7, %s1595_s12 }
  0x90   : > { %v208_v1 = vld [vmem:[%s206_s5] ss:$8 sm:$0x30]  ;;  %s218_s19 = scalar_lea.vmem [#allocation5], %s217_s11  ;;  %s1108_s10 = smul.u32 48, %s233_s3 }
  0x91   : > { %v209_v3 = vor.u32 %v208_v1, %v207_v0  ;;  %v219_v4 = vld [vmem:[%s218_s19] ss:$8 sm:$0xf]  ;;  %s244_s23 = sadd.s32 4, %s1598_s6  ;;  %s264_s22 = sshra.s32 %s1601_s14, 3 }
  0x92   : > { %v220_v5 = vld [vmem:[%s218_s19] ss:$8 sm:$0x30]  ;;  %s245_s20 = sshra.s32 %s244_s23, 3  ;;  %s248_s21 = sand.u32 7, %s244_s23 }
  0x93   : > { %v221_v6 = vor.u32 %v220_v5, %v219_v4  ;;  %s239_s1 = sadd.s32 %s1108_s10, %s236_s16  ;;  %s1109_s2 = smul.u32 48, %s245_s20 }
  0x94   : > { %s240_s3 = scalar_lea.vmem [#allocation5], %s239_s1  ;;  %s267_s6 = sand.u32 7, %s1601_s14 }
  0x95   : > { %v222_v8 = vadd.f32 %v221_v6, %v209_v3  ;;  %v241_v9 = vld [vmem:[%s240_s3] ss:$8 sm:$0xf]  ;;  %s251_s12 = sadd.s32 %s1109_s2, %s248_s21  ;;  %s1110_s15 = smul.u32 48, %s264_s22 }
  0x96   : > { %v242_v10 = vld [vmem:[%s240_s3] ss:$8 sm:$0x30]  ;;  %s252_s19 = scalar_lea.vmem [#allocation5], %s251_s12  ;;  %s275_s24 = sadd.s32 4, %s1604_s18 }
  0x97   : > { %227 = vst.msk [vmem:[#allocation2] ss:$8 sm:$0xf] %vm1611_vm0, %v222_v8  ;;  %228 = vst.msk [vmem:[#allocation2] ss:$8 sm:$0x30] %vm1611_vm0, %v222_v8  ;;  %v243_v11 = vor.u32 %v242_v10, %v241_v9  ;;  %s270_s11 = sadd.s32 %s1110_s15, %s267_s6 }
  0x98   : > { %v253_v12 = vld [vmem:[%s252_s19] ss:$8 sm:$0xf]  ;;  %s276_s29 = sshra.s32 %s275_s24, 3  ;;  %s279_s5 = sand.u32 7, %s275_s24 }
  0x99   : > { %v254_v13 = vld [vmem:[%s252_s19] ss:$8 sm:$0x30]  ;;  %s1111_s16 = smul.u32 48, %s276_s29  ;;  %s1921_s10 = sadd.s32 3, %s1587_s13 }
  0x9a   : > { %v255_v14 = vor.u32 %v254_v13, %v253_v12  ;;  %s292_s23 = sld [smem:[#allocation4 + %s1921_s10]]  ;;  %s271_s14 = scalar_lea.vmem [#allocation5], %s270_s11  ;;  %v709_v3 = vld [vmem:[#allocation8 + $0x18] sm:$0xff] }
  0x9b   : > { %v272_v16 = vld [vmem:[%s271_s14] ss:$8 sm:$0xf]  ;;  %s282_s20 = sadd.s32 %s1111_s16, %s279_s5  ;;  %s293_s18 = sadd.s32 3, %s1591_s17 }
  0x9c   : > { %v256_v15 = vadd.f32 %v255_v14, %v243_v11  ;;  %v273_v17 = vld [vmem:[%s271_s14] ss:$8 sm:$0x30]  ;;  %s283_s21 = scalar_lea.vmem [#allocation5], %s282_s20  ;;  %s294_s1 = sld [smem:[#allocation4 + %s293_s18]] }
  0x9d   : > { %v274_v18 = vor.u32 %v273_v17, %v272_v16  ;;  %v284_v19 = vld [vmem:[%s283_s21] ss:$8 sm:$0xf]  ;;  %s322_s2 = sadd.s32 4, %s1587_s13  ;;  %s324_s3 = sadd.s32 4, %s1591_s17 }
  0x9e   : > { %258 = vst.msk [vmem:[#allocation2 + $0x1] ss:$8 sm:$0xf] %vm1611_vm0, %v256_v15  ;;  %259 = vst.msk [vmem:[#allocation2 + $0x1] ss:$8 sm:$0x30] %vm1611_vm0, %v256_v15 }
  0x9f   : > { %v285_v20 = vld [vmem:[%s283_s21] ss:$8 sm:$0x30]  ;;  %s323_s22 = sld [smem:[#allocation4 + %s322_s2]]  ;;  %s353_s24 = sadd.s32 5, %s1587_s13  ;;  %v710_v15 = vld [vmem:[#allocation8 + $0x20] sm:$0xff] }
  0xa0   : > { %v286_v21 = vor.u32 %v285_v20, %v284_v19  ;;  %s295_s12 = sshra.s32 %s292_s23, 3  ;;  %s298_s6 = sand.u32 7, %s292_s23 }
  0xa1   : > { %s1112_s19 = smul.u32 48, %s295_s12  ;;  %s1631_s15 = sld [smem:[#allocation4 + %s324_s3]] }
  0xa2   : > { %v287_v22 = vadd.f32 %v286_v21, %v274_v18  ;;  %s306_s5 = sadd.s32 4, %s294_s1  ;;  %s1638_s11 = sld [smem:[#allocation4 + %s353_s24]]  ;;  %v711_v21 = vld [vmem:[#allocation8 + $0x28] sm:$0xff] }
  0xa3   : > { %s301_s29 = sadd.s32 %s1112_s19, %s298_s6  ;;  %s355_s16 = sadd.s32 5, %s1591_s17 }
  0xa4   : > { %289 = vst.msk [vmem:[#allocation2 + $0x2] ss:$8 sm:$0xf] %vm1611_vm0, %v287_v22  ;;  %290 = vst.msk [vmem:[#allocation2 + $0x2] ss:$8 sm:$0x30] %vm1611_vm0, %v287_v22 }
  0xa5   : > { %s302_s10 = scalar_lea.vmem [#allocation5], %s301_s29  ;;  %s307_s14 = sshra.s32 %s306_s5, 3 }
  0xa6   : > { %v303_v23 = vld [vmem:[%s302_s10] ss:$8 sm:$0xf]  ;;  %s310_s23 = sand.u32 7, %s306_s5  ;;  %s1113_s20 = smul.u32 48, %s307_s14 }
  0xa7   : > { %v304_v24 = vld [vmem:[%s302_s10] ss:$8 sm:$0x30]  ;;  %s326_s18 = sshra.s32 %s323_s22, 3  ;;  %s329_s21 = sand.u32 7, %s323_s22 }
  0xa8   : > { %s1114_s2 = smul.u32 48, %s326_s18  ;;  %s313_s3 = sadd.s32 %s1113_s20, %s310_s23  ;;  %v305_v25 = vor.u32 %v304_v24, %v303_v23 }
  0xa9   : > { %s337_s12 = sadd.s32 4, %s1631_s15  ;;  %s314_s27 = scalar_lea.vmem [#allocation5], %s313_s3 }
  0xaa   : > { %s332_s7 = sadd.s32 %s1114_s2, %s329_s21  ;;  %v315_v26 = vld [vmem:[%s314_s27] ss:$8 sm:$0xf]  ;;  %s338_s1 = sshra.s32 %s337_s12, 3 }
  0xab   : > { %v316_v27 = vld [vmem:[%s314_s27] ss:$8 sm:$0x30]  ;;  %s333_s6 = scalar_lea.vmem [#allocation5], %s332_s7  ;;  %s341_s19 = sand.u32 7, %s337_s12 }
  0xac   : > { %v317_v28 = vor.u32 %v316_v27, %v315_v26  ;;  %v334_v29 = vld [vmem:[%s333_s6] ss:$8 sm:$0xf]  ;;  %s1115_s24 = smul.u32 48, %s338_s1  ;;  %s356_s22 = sld [smem:[#allocation4 + %s355_s16]] }
  0xad   : > { %v335_v31 = vld [vmem:[%s333_s6] ss:$8 sm:$0x30]  ;;  %s357_s29 = sshra.s32 %s1638_s11, 3  ;;  %s360_s27 = sand.u32 7, %s1638_s11 }
  0xae   : > { %v318_v30 = vadd.f32 %v317_v28, %v305_v25  ;;  %s344_s15 = sadd.s32 %s1115_s24, %s341_s19  ;;  %v336_v32 = vor.u32 %v335_v31, %v334_v29  ;;  %s1116_s5 = smul.u32 48, %s357_s29 }
  0xaf   : > { %s345_s7 = scalar_lea.vmem [#allocation5], %s344_s15  ;;  %s384_s16 = sadd.s32 6, %s1587_s13 }
  0xb0   : > { %320 = vst.msk [vmem:[#allocation2 + $0x3] ss:$8 sm:$0xf] %vm1611_vm0, %v318_v30  ;;  %321 = vst.msk [vmem:[#allocation2 + $0x3] ss:$8 sm:$0x30] %vm1611_vm0, %v318_v30  ;;  %s363_s10 = sadd.s32 %s1116_s5, %s360_s27 }
  0xb1   : > { %v346_v33 = vld [vmem:[%s345_s7] ss:$8 sm:$0xf]  ;;  %s1649_s14 = sld [smem:[#allocation4 + %s384_s16]]  ;;  %s386_s20 = sadd.s32 6, %s1591_s17 }
  0xb2   : > { %v347_v34 = vld [vmem:[%s345_s7] ss:$8 sm:$0x30]  ;;  %s368_s23 = sadd.s32 4, %s356_s22  ;;  %s364_s11 = scalar_lea.vmem [#allocation5], %s363_s10 }
  0xb3   : > { %v348_v35 = vor.u32 %v347_v34, %v346_v33  ;;  %v365_v37 = vld [vmem:[%s364_s11] ss:$8 sm:$0xf]  ;;  %s369_s18 = sshra.s32 %s368_s23, 3  ;;  %s372_s21 = sand.u32 7, %s368_s23 }
  0xb4   : > { %v366_v38 = vld [vmem:[%s364_s11] ss:$8 sm:$0x30]  ;;  %s1117_s2 = smul.u32 48, %s369_s18  ;;  %s387_s3 = sld [smem:[#allocation4 + %s386_s20]] }
  0xb5   : > { %v349_v36 = vadd.f32 %v348_v35, %v336_v32  ;;  %s415_s12 = sadd.s32 7, %s1587_s13  ;;  %s417_s1 = sadd.s32 7, %s1591_s17  ;;  %v367_v39 = vor.u32 %v366_v38, %v365_v37 }
  0xb6   : > { %s375_s6 = sadd.s32 %s1117_s2, %s372_s21  ;;  %s416_s15 = sld [smem:[#allocation4 + %s415_s12]] }
  0xb7   : > { %351 = vst.msk [vmem:[#allocation2 + $0x4] ss:$8 sm:$0xf] %vm1611_vm0, %v349_v36  ;;  %352 = vst.msk [vmem:[#allocation2 + $0x4] ss:$8 sm:$0x30] %vm1611_vm0, %v349_v36 }
  0xb8   : > { %s388_s19 = sshra.s32 %s1649_s14, 3  ;;  %s391_s24 = sand.u32 7, %s1649_s14 }
  0xb9   : > { %s376_s22 = scalar_lea.vmem [#allocation5], %s375_s6  ;;  %s1118_s29 = smul.u32 48, %s388_s19 }
  0xba   : > { %v377_v40 = vld [vmem:[%s376_s22] ss:$8 sm:$0xf]  ;;  %s399_s27 = sadd.s32 4, %s387_s3  ;;  %s418_s5 = sld [smem:[#allocation4 + %s417_s1]] }
  0xbb   : > { %v378_v41 = vld [vmem:[%s376_s22] ss:$8 sm:$0x30]  ;;  %s394_s7 = sadd.s32 %s1118_s29, %s391_s24  ;;  %s400_s10 = sshra.s32 %s399_s27, 3 }
  0xbc   : > { %v379_v42 = vor.u32 %v378_v41, %v377_v40  ;;  %s395_s16 = scalar_lea.vmem [#allocation5], %s394_s7  ;;  %s403_s14 = sand.u32 7, %s399_s27 }
  0xbd   : > { %v396_v44 = vld [vmem:[%s395_s16] ss:$8 sm:$0xf]  ;;  %s1119_s23 = smul.u32 48, %s400_s10  ;;  %s446_s20 = sadd.s32 8, %s1587_s13 }
  0xbe   : > { %v380_v43 = vadd.f32 %v379_v42, %v367_v39  ;;  %v397_v45 = vld [vmem:[%s395_s16] ss:$8 sm:$0x30]  ;;  %s419_s11 = sshra.s32 %s416_s15, 3  ;;  %s422_s18 = sand.u32 7, %s416_s15 }
  0xbf   : > { %s406_s21 = sadd.s32 %s1119_s23, %s403_s14  ;;  %s1120_s2 = smul.u32 48, %s419_s11  ;;  %v398_v46 = vor.u32 %v397_v45, %v396_v44 }
  0xc0   : > { %382 = vst.msk [vmem:[#allocation2 + $0x5] ss:$8 sm:$0xf] %vm1611_vm0, %v380_v43  ;;  %383 = vst.msk [vmem:[#allocation2 + $0x5] ss:$8 sm:$0x30] %vm1611_vm0, %v380_v43 }
  0xc1   : > { %s430_s3 = sadd.s32 4, %s418_s5  ;;  %s407_s12 = scalar_lea.vmem [#allocation5], %s406_s21 }
  0xc2   : > { %v408_v47 = vld [vmem:[%s407_s12] ss:$8 sm:$0xf]  ;;  %s425_s1 = sadd.s32 %s1120_s2, %s422_s18  ;;  %s431_s6 = sshra.s32 %s430_s3, 3 }
  0xc3   : > { %v409_v48 = vld [vmem:[%s407_s12] ss:$8 sm:$0x30]  ;;  %s426_s19 = scalar_lea.vmem [#allocation5], %s425_s1  ;;  %s434_s24 = sand.u32 7, %s430_s3 }
  0xc4   : > { %v410_v49 = vor.u32 %v409_v48, %v408_v47  ;;  %v427_v50 = vld [vmem:[%s426_s19] ss:$8 sm:$0xf]  ;;  %s1121_s22 = smul.u32 48, %s431_s6  ;;  %s447_s29 = sld [smem:[#allocation4 + %s446_s20]] }
  0xc5   : > { %v428_v52 = vld [vmem:[%s426_s19] ss:$8 sm:$0x30]  ;;  %s448_s15 = sadd.s32 8, %s1591_s17  ;;  %s477_s7 = sadd.s32 9, %s1587_s13 }
  0xc6   : > { %v411_v51 = vadd.f32 %v410_v49, %v398_v46  ;;  %s437_s27 = sadd.s32 %s1121_s22, %s434_s24  ;;  %s449_s5 = sld [smem:[#allocation4 + %s448_s15]]  ;;  %v429_v53 = vor.u32 %v428_v52, %v427_v50 }
  0xc7   : > { %s438_s10 = scalar_lea.vmem [#allocation5], %s437_s27  ;;  %s1671_s16 = sld [smem:[#allocation4 + %s477_s7]] }
  0xc8   : > { %413 = vst.msk [vmem:[#allocation2 + $0x6] ss:$8 sm:$0xf] %vm1611_vm0, %v411_v51  ;;  %414 = vst.msk [vmem:[#allocation2 + $0x6] ss:$8 sm:$0x30] %vm1611_vm0, %v411_v51 }
  0xc9   : > { %v439_v54 = vld [vmem:[%s438_s10] ss:$8 sm:$0xf]  ;;  %s479_s14 = sadd.s32 9, %s1591_s17  ;;  %s508_s20 = sadd.s32 10, %s1587_s13 }
  0xca   : > { %v440_v55 = vld [vmem:[%s438_s10] ss:$8 sm:$0x30]  ;;  %s1674_s23 = sld [smem:[#allocation4 + %s479_s14]]  ;;  %s450_s11 = sshra.s32 %s447_s29, 3 }
  0xcb   : > { %v441_v56 = vor.u32 %v440_v55, %v439_v54  ;;  %s453_s18 = sand.u32 7, %s447_s29  ;;  %s1122_s21 = smul.u32 48, %s450_s11 }
  0xcc   : > { %s461_s2 = sadd.s32 4, %s449_s5 }
  0xcd   : > { %v442_v57 = vadd.f32 %v441_v56, %v429_v53  ;;  %s462_s3 = sshra.s32 %s461_s2, 3  ;;  %s465_s12 = sand.u32 7, %s461_s2 }
  0xce   : > { %s456_s1 = sadd.s32 %s1122_s21, %s453_s18  ;;  %s1123_s6 = smul.u32 48, %s462_s3 }
  0xcf   : > { %444 = vst.msk [vmem:[#allocation2 + $0x7] ss:$8 sm:$0xf] %vm1611_vm0, %v442_v57  ;;  %445 = vst.msk [vmem:[#allocation2 + $0x7] ss:$8 sm:$0x30] %vm1611_vm0, %v442_v57 }
  0xd0   : > { %s481_s19 = sshra.s32 %s1671_s16, 3  ;;  %s457_s24 = scalar_lea.vmem [#allocation5], %s456_s1 }
  0xd1   : > { %v458_v58 = vld [vmem:[%s457_s24] ss:$8 sm:$0xf]  ;;  %s468_s22 = sadd.s32 %s1123_s6, %s465_s12  ;;  %s484_s29 = sand.u32 7, %s1671_s16 }
  0xd2   : > { %v459_v59 = vld [vmem:[%s457_s24] ss:$8 sm:$0x30]  ;;  %s469_s15 = scalar_lea.vmem [#allocation5], %s468_s22  ;;  %s1124_s27 = smul.u32 48, %s481_s19 }
  0xd3   : > { %v460_v63 = vor.u32 %v459_v59, %v458_v58  ;;  %v470_v0 = vld [vmem:[%s469_s15] ss:$8 sm:$0xf]  ;;  %s492_s5 = sadd.s32 4, %s1674_s23  ;;  %s1692_s23 = sld [smem:[#allocation4 + %s508_s20]] }
  0xd4   : > { %v471_v1 = vld [vmem:[%s469_s15] ss:$8 sm:$0x30]  ;;  %s493_s7 = sshra.s32 %s492_s5, 3  ;;  %s496_s10 = sand.u32 7, %s492_s5 }
  0xd5   : > { %v472_v4 = vor.u32 %v471_v1, %v470_v0  ;;  %s487_s16 = sadd.s32 %s1124_s27, %s484_s29  ;;  %s1125_s14 = smul.u32 48, %s493_s7 }
  0xd6   : > { %v694_v5 = vld [vmem:[#allocation2] sm:$0xff]  ;;  %v695_v6 = vld [vmem:[#allocation2 + $0x8] sm:$0xff]  ;;  %v696_v8 = vld [vmem:[#allocation2 + $0x10] sm:$0xff]  ;;  %s488_s11 = scalar_lea.vmem [#allocation5], %s487_s16  ;;  %s510_s20 = sadd.s32 10, %s1591_s17 }
  0xd7   : > { %v697_v9 = vld [vmem:[#allocation2 + $0x18] sm:$0xff]  ;;  %v1684_v10 = vadd.f32 %v706_v60, %v694_v5  ;;  %v1686_v11 = vadd.f32 %v707_v61, %v695_v6  ;;  %v1688_v12 = vadd.f32 %v708_v62, %v696_v8  ;;  %v473_v13 = vadd.f32 %v472_v4, %v460_v63  ;;  %v698_v14 = vld [vmem:[#allocation2 + $0x20] sm:$0xff]  ;;  %s499_s18 = sadd.s32 %s1125_s14, %s496_s10  ;;  %v699_v20 = vld [vmem:[#allocation2 + $0x28] sm:$0xff]  ;;  %s511_s2 = sld [smem:[#allocation4 + %s510_s20]] }
  0xd8   : > { %v1694_v16 = vadd.f32 %v709_v3, %v697_v9  ;;  %v489_v18 = vld [vmem:[%s488_s11] ss:$8 sm:$0xf]  ;;  %v1703_v23 = vadd.f32 %v710_v15, %v698_v14  ;;  %s500_s21 = scalar_lea.vmem [#allocation5], %s499_s18  ;;  %s539_s3 = sadd.s32 11, %s1587_s13  ;;  %v1707_v28 = vadd.f32 %v711_v21, %v699_v20 }
  0xd9   : > { %v730_v17 = vadd.f32 %v1686_v11, %v1684_v10  ;;  %475 = vst.msk [vmem:[#allocation2 + $0x30] ss:$8 sm:$0xf] %vm1611_vm0, %v473_v13  ;;  %476 = vst.msk [vmem:[#allocation2 + $0x30] ss:$8 sm:$0x30] %vm1611_vm0, %v473_v13 }
  0xda   : > { %v490_v19 = vld [vmem:[%s488_s11] ss:$8 sm:$0x30]  ;;  %s1710_s12 = sld [smem:[#allocation4 + %s539_s3]]  ;;  %s541_s1 = sadd.s32 11, %s1591_s17  ;;  %v715_v20 = vld [vmem:[#allocation8 + $0x48] sm:$0xff] }
  0xdb   : > { %v491_v22 = vor.u32 %v490_v19, %v489_v18  ;;  %v731_v24 = vadd.f32 %v730_v17, %v1688_v12  ;;  %v501_v25 = vld [vmem:[%s500_s21] ss:$8 sm:$0xf]  ;;  %s512_s6 = sshra.s32 %s1692_s23, 3  ;;  %s515_s19 = sand.u32 7, %s1692_s23 }
  0xdc   : > { %v502_v26 = vld [vmem:[%s500_s21] ss:$8 sm:$0x30]  ;;  %s1126_s24 = smul.u32 48, %s512_s6  ;;  %s1716_s22 = sld [smem:[#allocation4 + %s541_s1]]  ;;  %v714_v19 = vld [vmem:[#allocation8 + $0x40] sm:$0xff] }
  0xdd   : > { %v503_v27 = vor.u32 %v502_v26, %v501_v25  ;;  %v732_v29 = vadd.f32 %v731_v24, %v1694_v16  ;;  %s570_s29 = sadd.s32 12, %s1587_s13  ;;  %s523_s27 = sadd.s32 4, %s511_s2  ;;  %v712_v17 = vld [vmem:[#allocation8 + $0x30] sm:$0xff]  ;;  %v713_v18 = vld [vmem:[#allocation8 + $0x38] sm:$0xff] }
  0xde   : > { %s518_s15 = sadd.s32 %s1126_s24, %s515_s19  ;;  %s1724_s5 = sld [smem:[#allocation4 + %s570_s29]] }
  0xdf   : > { %v504_v30 = vadd.f32 %v503_v27, %v491_v22  ;;  %v733_v31 = vadd.f32 %v732_v29, %v1703_v23  ;;  %s572_s7 = sadd.s32 12, %s1591_s17  ;;  %s519_s10 = scalar_lea.vmem [#allocation5], %s518_s15 }
  0xe0   : > { %v520_v33 = vld [vmem:[%s519_s10] ss:$8 sm:$0xf]  ;;  %s524_s16 = sshra.s32 %s523_s27, 3  ;;  %s527_s14 = sand.u32 7, %s523_s27 }
  0xe1   : > { %506 = vst.msk [vmem:[#allocation2 + $0x31] ss:$8 sm:$0xf] %vm1611_vm0, %v504_v30  ;;  %507 = vst.msk [vmem:[#allocation2 + $0x31] ss:$8 sm:$0x30] %vm1611_vm0, %v504_v30  ;;  %v734_v32 = vadd.f32 %v733_v31, %v1707_v28 }
  0xe2   : > { %v521_v34 = vld [vmem:[%s519_s10] ss:$8 sm:$0x30]  ;;  %s1127_s23 = smul.u32 48, %s524_s16  ;;  %s543_s11 = sshra.s32 %s1710_s12, 3 }
  0xe3   : > { %735 = vadd.xlane.f32.xlu0 %v734_v32  ;;  %s546_s18 = sand.u32 7, %s1710_s12  ;;  %s1128_s20 = smul.u32 48, %s543_s11  ;;  %v522_v35 = vor.u32 %v521_v34, %v520_v33  ;;  %v716_v31 = vld [vmem:[#allocation8 + $0x50] sm:$0xff] }
  0xe4   : > { %s530_s21 = sadd.s32 %s1127_s23, %s527_s14  ;;  %s554_s3 = sadd.s32 4, %s1716_s22 }
  0xe5   : > { %s549_s1 = sadd.s32 %s1128_s20, %s546_s18  ;;  %s531_s6 = scalar_lea.vmem [#allocation5], %s530_s21 }
  0xe6   : > { %v532_v36 = vld [vmem:[%s531_s6] ss:$8 sm:$0xf]  ;;  %s555_s2 = sshra.s32 %s554_s3, 3  ;;  %s550_s19 = scalar_lea.vmem [#allocation5], %s549_s1 }
  0xe7   : > { %v533_v37 = vld [vmem:[%s531_s6] ss:$8 sm:$0x30]  ;;  %s558_s24 = sand.u32 7, %s554_s3  ;;  %s1129_s29 = smul.u32 48, %s555_s2 }
  0xe8   : > { %v534_v38 = vor.u32 %v533_v37, %v532_v36  ;;  %v551_v39 = vld [vmem:[%s550_s19] ss:$8 sm:$0xf]  ;;  %s573_s12 = sld [smem:[#allocation4 + %s572_s7]]  ;;  %s574_s15 = sshra.s32 %s1724_s5, 3 }
  0xe9   : > { %v552_v41 = vld [vmem:[%s550_s19] ss:$8 sm:$0x30]  ;;  %s561_s22 = sadd.s32 %s1129_s29, %s558_s24  ;;  %s577_s27 = sand.u32 7, %s1724_s5 }
  0xea   : > { %v535_v40 = vadd.f32 %v534_v38, %v522_v35  ;;  %v553_v42 = vor.u32 %v552_v41, %v551_v39  ;;  %s1130_s10 = smul.u32 48, %s574_s15  ;;  %s562_s16 = scalar_lea.vmem [#allocation5], %s561_s22  ;;  %v717_v35 = vld [vmem:[#allocation8 + $0x58] sm:$0xff] }
  0xeb   : > { %v563_v43 = vld [vmem:[%s562_s16] ss:$8 sm:$0xf]  ;;  %s601_s7 = sadd.s32 13, %s1587_s13  ;;  %s603_s18 = sadd.s32 13, %s1591_s17 }
  0xec   : > { %537 = vst.msk [vmem:[#allocation2 + $0x32] ss:$8 sm:$0xf] %vm1611_vm0, %v535_v40  ;;  %538 = vst.msk [vmem:[#allocation2 + $0x32] ss:$8 sm:$0x30] %vm1611_vm0, %v535_v40  ;;  %s580_s14 = sadd.s32 %s1130_s10, %s577_s27 }
  0xed   : > { %v564_v44 = vld [vmem:[%s562_s16] ss:$8 sm:$0x30]  ;;  %s1737_s23 = sld [smem:[#allocation4 + %s601_s7]]  ;;  %s581_s5 = scalar_lea.vmem [#allocation5], %s580_s14 }
  0xee   : > { %v565_v45 = vor.u32 %v564_v44, %v563_v43  ;;  %s585_s11 = sadd.s32 4, %s573_s12  ;;  %v582_v47 = vld [vmem:[%s581_s5] ss:$8 sm:$0xf]  ;;  %s604_s1 = sld [smem:[#allocation4 + %s603_s18]] }
  0xef   : > { %s586_s20 = sshra.s32 %s585_s11, 3  ;;  %s589_s21 = sand.u32 7, %s585_s11  ;;  %v583_v48 = vld [vmem:[%s581_s5] ss:$8 sm:$0x30] }
  0xf0   : > { %v566_v46 = vadd.f32 %v565_v45, %v553_v42  ;;  %s1131_s3 = smul.u32 48, %s586_s20  ;;  %s632_s6 = sadd.s32 14, %s1587_s13  ;;  %v584_v49 = vor.u32 %v583_v48, %v582_v47 }
  0xf1   : > { %s634_s2 = sadd.s32 14, %s1591_s17  ;;  %s633_s22 = sld [smem:[#allocation4 + %s632_s6]] }
  0xf2   : > { %568 = vst.msk [vmem:[#allocation2 + $0x33] ss:$8 sm:$0xf] %vm1611_vm0, %v566_v46  ;;  %569 = vst.msk [vmem:[#allocation2 + $0x33] ss:$8 sm:$0x30] %vm1611_vm0, %v566_v46  ;;  %s592_s19 = sadd.s32 %s1131_s3, %s589_s21 }
  0xf3   : > { %s605_s24 = sshra.s32 %s1737_s23, 3  ;;  %s608_s29 = sand.u32 7, %s1737_s23 }
  0xf4   : > { %s593_s12 = scalar_lea.vmem [#allocation5], %s592_s19  ;;  %s1132_s15 = smul.u32 48, %s605_s24 }
  0xf5   : > { %v594_v50 = vld [vmem:[%s593_s12] ss:$8 sm:$0xf]  ;;  %s616_s27 = sadd.s32 4, %s604_s1  ;;  %s635_s10 = sld [smem:[#allocation4 + %s634_s2]] }
  0xf6   : > { %v595_v51 = vld [vmem:[%s593_s12] ss:$8 sm:$0x30]  ;;  %s611_s16 = sadd.s32 %s1132_s15, %s608_s29  ;;  %s617_s14 = sshra.s32 %s616_s27, 3 }
  0xf7   : > { %v596_v52 = vor.u32 %v595_v51, %v594_v50  ;;  %s612_s7 = scalar_lea.vmem [#allocation5], %s611_s16  ;;  %s620_s23 = sand.u32 7, %s616_s27 }
  0xf8   : > { %v613_v54 = vld [vmem:[%s612_s7] ss:$8 sm:$0xf]  ;;  %s1133_s11 = smul.u32 48, %s617_s14  ;;  %s663_s18 = sadd.s32 15, %s1587_s13 }
  0xf9   : > { %v597_v53 = vadd.f32 %v596_v52, %v584_v49  ;;  %v614_v55 = vld [vmem:[%s612_s7] ss:$8 sm:$0x30]  ;;  %s636_s5 = sshra.s32 %s633_s22, 3  ;;  %s639_s20 = sand.u32 7, %s633_s22 }
  0xfa   : > { %s623_s21 = sadd.s32 %s1133_s11, %s620_s23  ;;  %s1134_s3 = smul.u32 48, %s636_s5  ;;  %v615_v56 = vor.u32 %v614_v55, %v613_v54 }
  0xfb   : > { %599 = vst.msk [vmem:[#allocation2 + $0x34] ss:$8 sm:$0xf] %vm1611_vm0, %v597_v53  ;;  %600 = vst.msk [vmem:[#allocation2 + $0x34] ss:$8 sm:$0x30] %vm1611_vm0, %v597_v53 }
  0xfc   : > { %s647_s1 = sadd.s32 4, %s635_s10  ;;  %s624_s6 = scalar_lea.vmem [#allocation5], %s623_s21 }
  0xfd   : > { %v625_v57 = vld [vmem:[%s624_s6] ss:$8 sm:$0xf]  ;;  %s642_s2 = sadd.s32 %s1134_s3, %s639_s20  ;;  %s648_s19 = sshra.s32 %s647_s1, 3 }
  0xfe   : > { %v626_v58 = vld [vmem:[%s624_s6] ss:$8 sm:$0x30]  ;;  %s643_s24 = scalar_lea.vmem [#allocation5], %s642_s2  ;;  %s651_s29 = sand.u32 7, %s647_s1 }
  0xff   : > { %v627_v59 = vor.u32 %v626_v58, %v625_v57  ;;  %v644_v60 = vld [vmem:[%s643_s24] ss:$8 sm:$0xf]  ;;  %s1135_s12 = smul.u32 48, %s648_s19  ;;  %s664_s13 = sld [smem:[#allocation4 + %s663_s18]] }
 0x100   : > { %v645_v62 = vld [vmem:[%s643_s24] ss:$8 sm:$0x30]  ;;  %s665_s15 = sadd.s32 15, %s1591_s17  ;;  %s191_s1 = sand.u32 1, %s1382_s26  }
 0x101   : > { %v628_v61 = vadd.f32 %v627_v59, %v615_v56  ;;  %s654_s22 = sadd.s32 %s1135_s12, %s651_s29  ;;  %s666_s27 = sld [smem:[#allocation4 + %s665_s15]]  ;;  %v646_v63 = vor.u32 %v645_v62, %v644_v60 }
 0x102   : > { %s655_s10 = scalar_lea.vmem [#allocation5], %s654_s22  ;;  %s1143_s6 = smul.u32 96, %s191_s1 }
 0x103   : > { %630 = vst.msk [vmem:[#allocation2 + $0x35] ss:$8 sm:$0xf] %vm1611_vm0, %v628_v61  ;;  %631 = vst.msk [vmem:[#allocation2 + $0x35] ss:$8 sm:$0x30] %vm1611_vm0, %v628_v61 }
 0x104   : > { %v656_v0 = vld [vmem:[%s655_s10] ss:$8 sm:$0xf]  ;;  %s1820_s2 = scalar_lea.vmem [#allocation11], %s1143_s6  ;;  %s1144_s19 = smul.u32 1536, %s1459_s0 }
 0x105   : > { %v657_v1 = vld [vmem:[%s655_s10] ss:$8 sm:$0x30]  ;;  %s667_s16 = sshra.s32 %s664_s13, 3  ;;  %s670_s14 = sand.u32 7, %s664_s13 }
 0x106   : > { %v658_v3 = vor.u32 %v657_v1, %v656_v0  ;;  %s1136_s7 = smul.u32 48, %s667_s16  ;;  %s918_s24 = sshll.u32 %s1820_s2, 4  ;;  %s1841_s24 = int_to_ptr.vmem [resolvable:$true] %s918_s24 }
 0x107   : > { %s678_s23 = sadd.s32 4, %s666_s27  ;;  %s1839_s12 = scalar_lea.hbm %s1896_s4, %s1144_s19 }
 0x108   : > { %v659_v4 = vadd.f32 %v658_v3, %v646_v63  ;;  %s679_s17 = sshra.s32 %s678_s23, 3  ;;  %s682_s11 = sand.u32 7, %s678_s23 }
 0x109   : > { %s673_s18 = sadd.s32 %s1136_s7, %s670_s14  ;;  %s1137_s5 = smul.u32 48, %s679_s17 }
 0x10a   : > { %661 = vst.msk [vmem:[#allocation2 + $0x36] ss:$8 sm:$0xf] %vm1611_vm0, %v659_v4  ;;  %662 = vst.msk [vmem:[#allocation2 + $0x36] ss:$8 sm:$0x30] %vm1611_vm0, %v659_v4 }
 0x10b   : > { %s674_s20 = scalar_lea.vmem [#allocation5], %s673_s18  ;;  %s685_s21 = sadd.s32 %s1137_s5, %s682_s11 }
 0x10c   : > { %v675_v5 = vld [vmem:[%s674_s20] ss:$8 sm:$0xf]  ;;  %s686_s3 = scalar_lea.vmem [#allocation5], %s685_s21  ;;  %s1851_s13 = scalar_lea.sflag [#allocation7], %s191_s1 }
 0x10d   : > { %v676_v6 = vld [vmem:[%s674_s20] ss:$8 sm:$0x30]  ;;  %s1318_s15 = scalar_lea.vmem %s1841_s24, 1536  ;;  %s1398_s22 = smov [#allocation11]  }
 0x10e   : > { %v677_v8 = vor.u32 %v676_v6, %v675_v5  ;;  %v687_v9 = vld [vmem:[%s686_s3] ss:$8 sm:$0xf]  ;;  %p1319_p13 = scmp.ne.s32.totalorder %s1841_s24, %s1318_s15  ;;  %s1322_s27 = sshll.u32 %s1398_s22, 4  ;;  %s1323_s27 = int_to_ptr.vmem [resolvable:$false] %s1322_s27 }
 0x10f   : > { %v688_v13 = vld [vmem:[%s686_s3] ss:$8 sm:$0x30]  ;;  %s1324_s10 = scalar_lea.vmem %s1323_s27, 3072  ;;  %p1325_p0 = scmp.lt.s32.totalorder %s1841_s24, %s1323_s27 }
 0x110   : > { %v689_v14 = vor.u32 %v688_v13, %v687_v9  ;;  %p1320_p10 = pnand %p1319_p13, %p1922_p1  ;;  %p1326_p2 = scmp.lt.s32.totalorder %s1324_s10, %s1318_s15 }
 0x112   : > { %v690_v15 = vadd.f32 %v689_v14, %v677_v8  ;;  %p1321_p11 = pneg %p1320_p10  ;;  %p1327_p4 = por %p1326_p2, %p1325_p0 }
 0x114   : > { %692 = vst.msk [vmem:[#allocation2 + $0x37] ss:$8 sm:$0xf] %vm1611_vm0, %v690_v15  ;;  %693 = vst.msk [vmem:[#allocation2 + $0x37] ss:$8 sm:$0x30] %vm1611_vm0, %v690_v15  ;;  %p1328_p9 = pnand %p1327_p4, %p1321_p11 }
 0x11b   : > { %v700_v21 = vld [vmem:[#allocation2 + $0x30] sm:$0xff]  ;;  %v701_v22 = vld [vmem:[#allocation2 + $0x38] sm:$0xff]  ;;  %v702_v24 = vld [vmem:[#allocation2 + $0x40] sm:$0xff] }
 0x11c   : > { %v703_v25 = vld [vmem:[#allocation2 + $0x48] sm:$0xff]  ;;  %v724_v26 = vadd.f32 %v712_v17, %v700_v21  ;;  %v725_v27 = vadd.f32 %v713_v18, %v701_v22  ;;  %v726_v29 = vadd.f32 %v714_v19, %v702_v24  ;;  %v704_v30 = vld [vmem:[#allocation2 + $0x50] sm:$0xff]  ;;  %v705_v34 = vld [vmem:[#allocation2 + $0x58] sm:$0xff]  ;;  %v808_v18 = vshrl.u32 %v223_v2, 7 }
 0x11d   : > { %v727_v32 = vadd.f32 %v715_v20, %v703_v25  ;;  %v728_v36 = vadd.f32 %v716_v31, %v704_v30  ;;  %v729_v37 = vadd.f32 %v717_v35, %v705_v34  ;;  %v791_v19 = vld [vmem:[#allocation10] ss:$2 sm:$0x3f] }
 0x11e   : > { %v737_v33 = vadd.f32 %v725_v27, %v724_v26  ;;  %v809_v20 = vsub.s32 0, %v808_v18  ;;  %v813_v21 = vsub.s32 1, %v808_v18  ;;  %v817_v22 = vsub.s32 2, %v808_v18 }
 0x11f   : > { %v821_v24 = vsub.s32 3, %v808_v18  ;;  %v825_v25 = vsub.s32 4, %v808_v18 }
 0x120   : > { %v738_v7 = vadd.f32 %v737_v33, %v726_v29  ;;  %v814_v30 = vrot.slane %v791_v19, %v813_v21  ;;  %v818_v31 = vrot.slane %v791_v19, %v817_v22 }
 0x121   : > { %v826_v33 = vrot.slane %v791_v19, %v825_v25 }
 0x122   : > { %v739_v38 = vadd.f32 %v738_v7, %v727_v32 }
 0x124   : > { %v740_v39 = vadd.f32 %v739_v38, %v728_v36 }
 0x126   : > { %v741_v40 = vadd.f32 %v740_v39, %v729_v37 }
 0x128   : > { %742 = vadd.xlane.f32.xlu0 %v741_v40 }
 0x170   : > { %v736_v41 = vpop.xlane.xlu0 %735 }
 0x171   : > { %v745_v42 = vmul.f32 0.0013020834, %v736_v41 }
 0x173   : > { %v1767_v43 = vsub.f32 %v1684_v10, %v745_v42  ;;  %v1770_v44 = vsub.f32 %v1686_v11, %v745_v42  ;;  %v1773_v45 = vsub.f32 %v1688_v12, %v745_v42  ;;  %v1776_v46 = vsub.f32 %v1694_v16, %v745_v42 }
 0x174   : > { %v751_v49 = vsub.f32 %v1703_v23, %v745_v42  ;;  %v752_v11 = vsub.f32 %v1707_v28, %v745_v42 }
 0x175   : > { %v759_v47 = vmul.f32 %v1767_v43, %v1767_v43  ;;  %v760_v48 = vmul.f32 %v1770_v44, %v1770_v44  ;;  %v761_v10 = vmul.f32 %v1773_v45, %v1773_v45  ;;  %v762_v12 = vmul.f32 %v1776_v46, %v1776_v46 }
 0x176   : > { %v763_v16 = vmul.f32 %v751_v49, %v751_v49  ;;  %v764_v53 = vmul.f32 %v752_v11, %v752_v11 }
 0x177   : > { %v771_v50 = vadd.f32 %v760_v48, %v759_v47 }
 0x179   : > { %v772_v51 = vadd.f32 %v771_v50, %v761_v10 }
 0x17b   : > { %v773_v52 = vadd.f32 %v772_v51, %v762_v12 }
 0x17d   : > { %v774_v54 = vadd.f32 %v773_v52, %v763_v16 }
 0x17f   : > { %v775_v55 = vadd.f32 %v774_v54, %v764_v53 }
 0x181   : > { %776 = vadd.xlane.f32.xlu1 %v775_v55 }
 0x1b5   : > { %v743_v56 = vpop.xlane.xlu0 %742 }
 0x1b6   : > { %v746_v57 = vmul.f32 0.0013020834, %v743_v56 }
 0x1b8   : > { %v1788_v58 = vsub.f32 %v724_v26, %v746_v57  ;;  %v1790_v23 = vsub.f32 %v725_v27, %v746_v57  ;;  %v1792_v59 = vsub.f32 %v726_v29, %v746_v57  ;;  %v1794_v60 = vsub.f32 %v727_v32, %v746_v57  ;;  %v793_v27 = vld [vmem:[#allocation10 + $0x1] ss:$2 sm:$0x3f] }
 0x1b9   : > { %v1800_v62 = vsub.f32 %v728_v36, %v746_v57  ;;  %v1804_v1 = vsub.f32 %v729_v37, %v746_v57  ;;  %v829_v26 = vsub.s32 5, %v808_v18  ;;  %v810_v29 = vrot.slane %v791_v19, %v809_v20 }
 0x1ba   : > { %v765_v28 = vmul.f32 %v1788_v58, %v1788_v58  ;;  %v766_v61 = vmul.f32 %v1790_v23, %v1790_v23  ;;  %v767_v63 = vmul.f32 %v1792_v59, %v1792_v59  ;;  %v768_v3 = vmul.f32 %v1794_v60, %v1794_v60 }
 0x1bb   : > { %v769_v5 = vmul.f32 %v1800_v62, %v1800_v62  ;;  %v770_v8 = vmul.f32 %v1804_v1, %v1804_v1  ;;  %v822_v32 = vrot.slane %v791_v19, %v821_v24  ;;  %v830_v34 = vrot.slane %v791_v19, %v829_v26 }
 0x1bc   : > { %v778_v0 = vadd.f32 %v766_v61, %v765_v28  ;;  %v853_v2 = vrot.slane %v793_v27, %v809_v20  ;;  %v857_v36 = vrot.slane %v793_v27, %v813_v21  ;;  %v861_v7 = vrot.slane %v793_v27, %v817_v22 }
 0x1bd   : > { %v865_v37 = vrot.slane %v793_v27, %v821_v24  ;;  %v869_v48 = vrot.slane %v793_v27, %v825_v25  ;;  %v873_v10 = vrot.slane %v793_v27, %v829_v26 }
 0x1be   : > { %v779_v4 = vadd.f32 %v778_v0, %v767_v63 }
 0x1c0   : > { %v780_v6 = vadd.f32 %v779_v4, %v768_v3 }
 0x1c2   : > { %v781_v9 = vadd.f32 %v780_v6, %v769_v5 }
 0x1c4   : > { %v782_v13 = vadd.f32 %v781_v9, %v770_v8 }
 0x1c6   : > { %783 = vadd.xlane.f32.xlu1 %v782_v13 }
 0x20e   : > { %v777_v14 = vpop.xlane.xlu1 %776 }
 0x20f   : > { %v785_v15 = vmul.f32 0.0013020834, %v777_v14 }
 0x211   : > { %v787_v17 = vadd.f32 1e-05, %v785_v15 }
 0x213   : > { %1220 = vrsqrt.f32 %v787_v17 }
 0x21d   : > { %v1221_v35 = vpop.eup %1220 }
 0x21e   : > { %v794_v38 = vmul.f32 %v1221_v35, %v1767_v43  ;;  %v795_v39 = vmul.f32 %v1221_v35, %v1770_v44  ;;  %v796_v40 = vmul.f32 %v1221_v35, %v1773_v45  ;;  %v797_v41 = vmul.f32 %v1221_v35, %v1776_v46 }
 0x21f   : > { %v798_v42 = vmul.f32 %v1221_v35, %v751_v49  ;;  %v799_v47 = vmul.f32 %v1221_v35, %v752_v11 }
 0x220   : > { %v837_v50 = vmul.f32 %v810_v29, %v794_v38  ;;  %v838_v12 = vmul.f32 %v814_v30, %v795_v39  ;;  %v839_v51 = vmul.f32 %v818_v31, %v796_v40  ;;  %v840_v16 = vmul.f32 %v822_v32, %v797_v41 }
 0x221   : > { %v841_v52 = vmul.f32 %v826_v33, %v798_v42  ;;  %v842_v53 = vmul.f32 %v830_v34, %v799_v47 }
 0x222   : > { %v880_v54 = vadd.f32 %v853_v2, %v837_v50  ;;  %v881_v55 = vadd.f32 %v857_v36, %v838_v12  ;;  %v882_v56 = vadd.f32 %v861_v7, %v839_v51  ;;  %v883_v43 = vadd.f32 %v865_v37, %v840_v16 }
 0x223   : > { %v884_v57 = vadd.f32 %v869_v48, %v841_v52  ;;  %v885_v44 = vadd.f32 %v873_v10, %v842_v53 }
 0x224   : > { %892 = vst [vmem:[%s1820_s2] sm:$0xff] %v880_v54  ;;  %893 = vst [vmem:[%s1820_s2 + $0x8] sm:$0xff] %v881_v55 }
 0x225   : > { %894 = vst [vmem:[%s1820_s2 + $0x10] sm:$0xff] %v882_v56  ;;  %895 = vst [vmem:[%s1820_s2 + $0x18] sm:$0xff] %v883_v43 }
 0x226   : > { %896 = vst [vmem:[%s1820_s2 + $0x20] sm:$0xff] %v884_v57  ;;  %897 = vst [vmem:[%s1820_s2 + $0x28] sm:$0xff] %v885_v44 }
 0x253   : > { %v784_v45 = vpop.xlane.xlu1 %783 }
 0x254   : > { %v786_v46 = vmul.f32 0.0013020834, %v784_v45 }
 0x256   : > { %v788_v49 = vadd.f32 1e-05, %v786_v46 }
 0x258   : > { %1222 = vrsqrt.f32 %v788_v49 }
 0x262   : > { %v1223_v11 = vpop.eup %1222 }
 0x263   : > { %v800_v28 = vmul.f32 %v1223_v11, %v1788_v58  ;;  %v801_v61 = vmul.f32 %v1223_v11, %v1790_v23  ;;  %v802_v63 = vmul.f32 %v1223_v11, %v1792_v59  ;;  %v803_v0 = vmul.f32 %v1223_v11, %v1794_v60 }
 0x264   : > { %v804_v3 = vmul.f32 %v1223_v11, %v1800_v62  ;;  %v805_v4 = vmul.f32 %v1223_v11, %v1804_v1 }
 0x265   : > { %v843_v5 = vmul.f32 %v810_v29, %v800_v28  ;;  %v844_v6 = vmul.f32 %v814_v30, %v801_v61  ;;  %v845_v8 = vmul.f32 %v818_v31, %v802_v63  ;;  %v846_v58 = vmul.f32 %v822_v32, %v803_v0 }
 0x266   : > { %v847_v23 = vmul.f32 %v826_v33, %v804_v3  ;;  %v848_v59 = vmul.f32 %v830_v34, %v805_v4 }
 0x267   : > { %v886_v60 = vadd.f32 %v853_v2, %v843_v5  ;;  %v887_v9 = vadd.f32 %v857_v36, %v844_v6  ;;  %v888_v62 = vadd.f32 %v861_v7, %v845_v8  ;;  %v889_v13 = vadd.f32 %v865_v37, %v846_v58 }
 0x268   : > { %v890_v1 = vadd.f32 %v869_v48, %v847_v23  ;;  %v891_v14 = vadd.f32 %v873_v10, %v848_v59 }
 0x269   : > { %898 = vst [vmem:[%s1820_s2 + $0x30] sm:$0xff] %v886_v60  ;;  %899 = vst [vmem:[%s1820_s2 + $0x38] sm:$0xff] %v887_v9 }
 0x26a   : > { %900 = vst [vmem:[%s1820_s2 + $0x40] sm:$0xff] %v888_v62  ;;  %901 = vst [vmem:[%s1820_s2 + $0x48] sm:$0xff] %v889_v13 }
 0x26b   : > { %902 = vst [vmem:[%s1820_s2 + $0x50] sm:$0xff] %v890_v1  ;;  %903 = vst [vmem:[%s1820_s2 + $0x58] sm:$0xff] %v891_v14 }
 0x26c   : > { %1331 = shalt.err (!%p1328_p9)
}
 0x26d   : > { %s1332_s16 = scalar_lea.hbm %s1839_s12, 1536  ;;  %s1336_s23 = scalar_lea.hbm %s1896_s4, 3072 }
 0x26e   : > { %p1333_p12 = scmp.ne.s32.totalorder %s1839_s12, %s1332_s16  ;;  %p1337_p3 = scmp.lt.u32.totalorder %s1839_s12, %s1896_s4 }
 0x26f   : > { %p1338_p7 = scmp.lt.u32.totalorder %s1336_s23, %s1332_s16  ;;  %p1340_p13 = scmp.lt.u32.totalorder %s1332_s16, %s1839_s12 }
 0x270   : > { %p1334_p5 = pnand %p1333_p12, %p1922_p1 }
 0x271   : > { %p1339_p8 = por %p1338_p7, %p1337_p3 }
 0x272   : > { %p1335_p6 = pneg %p1334_p5 }
 0x273   : > { %p1341_p10 = por %p1340_p13, %p1339_p8 }
 0x275   : > { %p1342_p11 = pnand %p1341_p10, %p1335_p6 }
 0x277   : > { %1345 = shalt.err (!%p1342_p11)
}
 0x278   : > { %s1399_s18 = smov 768   ;;  %s1400_s5 = smov 48  }
 0x279   : > { %1157 = dma.vmem_to_hbm [thread:$0]  (%p1922_p1), %s1841_s24, 1536, %s1839_s12, %s1851_s13, %s1399_s18, %s1399_s18, %s1400_s5  }
 0x27a PF: > { %p1179_p0 = scmp.ge.s32.totalorder %s1390_s28, 2  ;;  %s933_s20 = sand.u32 1, %s1378_s25  }
 0x27b   : > { %p1923_p2 = scmp.ne.s32.totalorder %s1907_s9, 0  ;;  %s934_s21 = scalar_lea.sflag [#allocation7], %s933_s20 }
 0x27d   : > { %p1170_p4 = pnand %p1179_p0, %p1923_p2 }
 0x27f   : > { %1373 = dma.done.wait (!%p1170_p4), %s934_s21, 1536  }
 0x280   : > { %1375 = vsyncadd (!%p1170_p4), %s934_s21, 4294965760  ;;  %s1924_s3 = sld [smem:[#allocation16_spill]]  ;;  %s1925_s27 = sld [smem:[#allocation17_spill]] }
 0x281   : > { %p20_p9 = scmp.ge.s32.totalorder %s1463_s30, 4   ;;  %s1926_s25 = smov %s1382_s26 }
 0x282   : > { %s1928_s28 = smov %s1463_s30 }
 0x283   :  { %22 = sbr.rel (!%p20_p9) target bundleno = 18 (0x12), region = 125 }
 0x286   : > { %s1927_s26 = smov %s1924_s3 }
 0x28a   :  { %939 = vsyncpa [#allocation6], 1 }
 0x28b   :  { %941 = vsyncpa [#allocation6 + $0x1], 1 }
 0x28c   :  { %942 = vsyncpa [#allocation9], 1 }
 0x28d   :  { %943 = vsyncpa [#allocation7], 1 }
 0x28e   :  { %945 = vsyncpa [#allocation7 + $0x1], 1 }

</bundles_post_ra>
